<compile_context>
chip_gen: v7x
topology: tpu7x:2x2x1
jax: 0.10.0
libtpu: 0.0.40
codegen_flags: <defaults>
</compile_context>

<pallas_src>
import functools

import jax
import jax.numpy as jnp
from jax import lax
from jax.experimental import pallas as pl
from jax.experimental.pallas import tpu as pltpu

_LANES = 128
# Plain Python floats (NOT jnp scalars) so they are baked into the kernel as
# immediates instead of being captured as pallas_call constants.
_SENT_NEG = -1e30
_SENT_POS = 1e30
_SENT_FLAG = 5e29


def _round_up(x, mult):
    return ((x + mult - 1) // mult) * mult


def _ring_loss_kernel(z_rows_ref, z_part_ref, z_t_ref, out_ref, *,
                      n, k, inv_tau, tile, rows_pad):
    m = 2 * n
    z_rows = z_rows_ref[...]          # (tile, d) row tile of Z (zero rows if padded)
    z_t = z_t_ref[...]                # (d, 2n), resident across all grid steps

    # Row tile of the fused similarity matrix S = Z @ Z.T -> (tile, 2n), f32 accum.
    s = jnp.dot(z_rows, z_t, preferred_element_type=jnp.float32)

    # Row-max shift: exp((s - rmax)/tau) cannot overflow even at tiny tau; the EUP
    # exp is hoisted above the trim loops so it overlaps the VPU/XLU passes below.
    rmax = jnp.max(s, axis=1, keepdims=True)                        # (tile, 1)
    e = jnp.exp((s - rmax) * inv_tau)                               # (tile, 2n)

    col = lax.broadcasted_iota(jnp.int32, s.shape, 1)

    # Reference semantics: sort each row descending and keep [k : 2n-k], i.e. drop
    # the k largest and k smallest.  The trimmed exp-sum only depends on WHICH
    # VALUES are dropped, so iteratively mask out the k row maxima then the k row
    # minima (one per pass, first-index tie break) and mask-sum the survivors.
    # Loops are unrolled (k is static) so adjacent passes' cross-lane reductions
    # interleave instead of serializing.
    # TODO(synk): for large k (> a few tens) switch to per-row bisection
    # order-statistic selection (~30 compare+count steps + tie-count correction).
    unroll = True if k <= 32 else 8

    def drop_max(_, v):
        mx = jnp.max(v, axis=1, keepdims=True)
        first = jnp.min(jnp.where(v == mx, col, m), axis=1, keepdims=True)
        return jnp.where(col == first, _SENT_NEG, v)

    v = lax.fori_loop(0, k, drop_max, s, unroll=unroll)
    # Re-flag dropped maxima so they can never be picked as minima.
    v = jnp.where(v < -_SENT_FLAG, _SENT_POS, v)

    def drop_min(_, v):
        mn = jnp.min(v, axis=1, keepdims=True)
        first = jnp.min(jnp.where(v == mn, col, m), axis=1, keepdims=True)
        return jnp.where(col == first, _SENT_POS, v)

    v = lax.fori_loop(0, k, drop_min, v, unroll=unroll)
    keep = v < _SENT_FLAG             # survivors of the two-sided trim (2n - 2k/row)
    trimmed = jnp.sum(jnp.where(keep, e, 0.0), axis=1, keepdims=True)   # (tile, 1)

    # Positive similarity straight from the partner rows (Z rolled by n):
    # pos_r = z_r . z_{(r+n) mod 2n}.  No (tile, 2n) iota masks, no extra reduce.
    pos = jnp.sum(z_rows.astype(jnp.float32) * z_part_ref[...].astype(jnp.float32),
                  axis=1, keepdims=True)                                # (tile, 1)

    # Per-row contribution 0.5*(log(neg_sum_r) - pos_r/tau); shift folded back in:
    # log(neg_sum) = log(trimmed) + rmax/tau.
    q = 0.5 * (jnp.log(trimmed) + (rmax - pos) * inv_tau)

    if rows_pad > m:                  # static branch: mask zero-padded rows
        r0 = pl.program_id(0) * tile
        row_ids = lax.broadcasted_iota(jnp.int32, q.shape, 0) + r0
        q = jnp.where(row_ids < m, q, 0.0)

    # One (8, 128) broadcast of the per-tile partial sum; the wrapper reads
    # sublane 0 / lane 0 of each tile block.
    out_ref[...] = jnp.broadcast_to(jnp.sum(q), (8, _LANES))


def ring_loss(h1, h2, y, tau, threshold=0.1, *, tile_rows=None,
              compute_dtype=jnp.float32, vmem_limit_bytes=None):
    """Pallas implementation of RingLoss.forward.  Returns a scalar float32 loss.

    `y` only feeds dead code in the reference forward (false_neg_mask /
    false_neg_cnt never touch the returned loss), so it never enters the kernel.
    compute_dtype=jnp.bfloat16 halves Z.T residency / HBM traffic and uses the
    native bf16 MXU path (trim/exp/log stay f32), at ~1e-3 agreement vs f32.
    `tau` is baked in as a static Python float (a traced tau would recompile).
    """
    del y
    n, d = h1.shape
    m = 2 * n
    k = int(n * threshold)
    if k == 0:
        # PyTorch `neg_sim[:, 0:-0]` is an *empty* slice: neg sums are 0 and every
        # per-row loss is -log(pos/0) = -inf; guard explicitly.
        return jnp.float32(-jnp.inf)

    # F.normalize(x): x / max(||x||_2, 1e-12), row-wise, done once in f32.
    z = jnp.concatenate([h1, h2], axis=0).astype(jnp.float32)
    nrm = jnp.sqrt(jnp.sum(z * z, axis=1, keepdims=True))
    z = z / jnp.maximum(nrm, 1e-12)
    # Partner rows: global row r pairs with row (r + n) mod 2n, i.e. [z2; z1].
    z_part = jnp.concatenate([z[n:], z[:n]], axis=0)

    itemsize = jnp.dtype(compute_dtype).itemsize
    z_t_bytes = d * m * itemsize                  # resident, single-buffered

    # Tile sizing: the kernel holds ~6 live (tile, 2N) f32 temporaries plus the
    # resident Z.T; pick the largest row tile that fits a conservative VMEM
    # budget.  Small problems then run as a single grid step (v5e/v6e fast path);
    # on v7x pass tile_rows explicitly so num_tiles >= 2 and both TCs get work.
    if tile_rows is None:
        budget = 24 * 1024 * 1024
        per_row = 6 * m * 4 + 4 * d * itemsize
        tile_rows = max(16, (budget - z_t_bytes) // max(per_row, 1))
    # Multiple of 16 keeps bf16 sublane packing legal (and is fine for f32).
    tile = _round_up(max(16, min(int(tile_rows), m)), 16)
    rows_pad = _round_up(m, tile)
    num_tiles = rows_pad // tile

    z_rows = jnp.pad(z, ((0, rows_pad - m), (0, 0))).astype(compute_dtype)
    z_part = jnp.pad(z_part, ((0, rows_pad - m), (0, 0))).astype(compute_dtype)
    z_t = z.T.astype(compute_dtype)               # (d, 2n), resident in VMEM

    # Raise the scoped VMEM limit only when the estimated working set needs it
    # (defaults: 16 MiB v5e, 32 MiB v6e/v7x).  Capped at 96 MiB; on v7x (64 MiB
    # physical) shrink tile_rows instead of raising this further.
    est_vmem = (z_t_bytes + 2 * 2 * tile * d * itemsize
                + 2 * 8 * _LANES * 4 + 8 * tile * m * 4)
    if vmem_limit_bytes is None and est_vmem > 32 * 1024 * 1024:
        vmem_limit_bytes = int(min(est_vmem + (4 << 20), 96 * 1024 * 1024))

    kernel = functools.partial(
        _ring_loss_kernel, n=n, k=k, inv_tau=float(1.0 / tau), tile=tile,
        rows_pad=rows_pad)

    # Z.T never changes across grid steps (constant index_map): single-buffer it
    # so it doesn't cost 2x VMEM.  Fall back cleanly on builds whose BlockSpec
    # has no pipeline_mode kwarg.
    try:
        z_t_spec = pl.BlockSpec((d, m), lambda i: (0, 0),
                                pipeline_mode=pl.Buffered(1))
    except TypeError:
        z_t_spec = pl.BlockSpec((d, m), lambda i: (0, 0))

    flops = 2.0 * rows_pad * m * d + (8.0 * k + 12.0) * rows_pad * m
    bytes_accessed = (itemsize * (2.0 * rows_pad * d + d * m)
                      + 4.0 * num_tiles * 8 * _LANES)

    partial = pl.pallas_call(
        kernel,
        out_shape=jax.ShapeDtypeStruct((num_tiles * 8, _LANES), jnp.float32),
        grid=(num_tiles,),
        in_specs=[
            pl.BlockSpec((tile, d), lambda i: (i, 0)),   # row tile of Z
            pl.BlockSpec((tile, d), lambda i: (i, 0)),   # partner rows (Z rolled by n)
            z_t_spec,                                    # Z.T, resident
        ],
        out_specs=pl.BlockSpec((8, _LANES), lambda i: (i, 0)),
        compiler_params=pltpu.CompilerParams(
            dimension_semantics=("parallel",),           # shard row tiles on megacore
            vmem_limit_bytes=vmem_limit_bytes,
        ),
        cost_estimate=pl.CostEstimate(
            flops=int(flops),
            transcendentals=int(rows_pad * m + rows_pad),
            bytes_accessed=int(bytes_accessed),
        ),
    )(z_rows, z_part, z_t)

    # Sublane 0 / lane 0 of each per-tile (8, 128) block holds its partial sum.
    return jnp.sum(partial[::8, 0]) / jnp.float32(n)


def ring_loss_reference(h1, h2, tau, threshold=0.1):
    """Pure-JAX reference mirroring the PyTorch code literally (real sort). k >= 1."""
    n = h1.shape[0]
    k = int(n * threshold)

    def normalize(x):
        nr = jnp.sqrt(jnp.sum(x * x, axis=1, keepdims=True))
        return x / jnp.maximum(nr, 1e-12)

    z1 = normalize(h1.astype(jnp.float32))
    z2 = normalize(h2.astype(jnp.float32))
    hi = lax.Precision.HIGHEST
    s11 = jnp.dot(z1, z1.T, precision=hi)
    s12 = jnp.dot(z1, z2.T, precision=hi)
    s21 = jnp.dot(z2, z1.T, precision=hi)
    s22 = jnp.dot(z2, z2.T, precision=hi)
    pos = jnp.exp(jnp.diag(s12) / tau)
    neg1 = -jnp.sort(-jnp.concatenate([s11, s12], axis=1), axis=1)[:, k: 2 * n - k]
    neg2 = -jnp.sort(-jnp.concatenate([s21, s22], axis=1), axis=1)[:, k: 2 * n - k]
    n1 = jnp.sum(jnp.exp(neg1 / tau), axis=1)
    n2 = jnp.sum(jnp.exp(neg2 / tau), axis=1)
    loss1 = -jnp.log(pos / n1)
    loss2 = -jnp.log(pos / n2)
    return jnp.mean(0.5 * (loss1 + loss2))


if __name__ == "__main__":
    key = jax.random.PRNGKey(0)
    k1, k2, k3 = jax.random.split(key, 3)

    N, D = 64, 32          # k = int(64*0.1) = 6 trimmed per side; 2N = 128 (lane aligned)
    h1 = jax.random.normal(k1, (N, D), dtype=jnp.float32)
    h2 = jax.random.normal(k2, (N, D), dtype=jnp.float32)
    y = jax.random.randint(k3, (N,), 0, 4, dtype=jnp.int32)
    tau = 0.5

    # tile_rows=32 -> 4 row tiles: exercises the pipelined / parallel grid.
    loss = ring_loss(h1, h2, y, tau, threshold=0.1, tile_rows=32)
    loss = jax.block_until_ready(loss)

    ref = jax.block_until_ready(ring_loss_reference(h1, h2, tau, threshold=0.1))
    assert jnp.allclose(loss, ref, rtol=1e-4, atol=1e-4), (loss, ref)

    print("KERNEL_OK")
</pallas_src>

<mosaic_0001>
module attributes {stable_mosaic.version = 11 : i64} {
  func.func @_ring_loss_kernel(%arg0: i32, %arg1: memref<32x32xf32, #tpu.memory_space<vmem>>, %arg2: memref<32x32xf32, #tpu.memory_space<vmem>>, %arg3: memref<32x128xf32, #tpu.memory_space<vmem>>, %arg4: memref<8x128xf32, #tpu.memory_space<vmem>>) attributes {dimension_semantics = [#tpu.dimension_semantics<parallel>], iteration_bounds = array<i64: 4>, scalar_prefetch = 0 : i64, scratch_operands = 0 : i64, tpu.core_type = #tpu.core_type<tc>, window_params = [{transform_indices = @transform_0, window_bounds = array<i64: 32, 32>}, {transform_indices = @transform_1, window_bounds = array<i64: 32, 32>}, {pipeline_mode = #tpu.pipeline_mode<synchronous>, transform_indices = @transform_2, window_bounds = array<i64: 32, 128>}, {transform_indices = @transform_3, window_bounds = array<i64: 8, 128>}]} {
    %c0 = arith.constant 0 : index
    %c0_0 = arith.constant 0 : index
    %0 = vector.load %arg1[%c0, %c0_0] : memref<32x32xf32, #tpu.memory_space<vmem>>, vector<32x32xf32>
    %c0_1 = arith.constant 0 : index
    %c0_2 = arith.constant 0 : index
    %1 = vector.load %arg3[%c0_1, %c0_2] : memref<32x128xf32, #tpu.memory_space<vmem>>, vector<32x128xf32>
    %cst = arith.constant dense<0.000000e+00> : vector<32x128xf32>
    %2 = tpu.matmul %0, %1, %cst {dimension_numbers = #tpu.dot_dimension_numbers<[1], [0], [0], [1], [0, 0, 1, 1], [], []>} : vector<32x32xf32>, vector<32x128xf32>, vector<32x128xf32> -> vector<32x128xf32>
    %cst_3 = arith.constant dense<0xFF800000> : vector<32xf32>
    %3 = vector.multi_reduction <maximumf>, %2, %cst_3 [1] : vector<32x128xf32> to vector<32xf32>
    %4 = vector.shape_cast %3 : vector<32xf32> to vector<32x1xf32>
    %5 = vector.broadcast %4 : vector<32x1xf32> to vector<32x128xf32>
    %6 = arith.subf %2, %5 : vector<32x128xf32>
    %cst_4 = arith.constant 2.000000e+00 : f32
    %7 = vector.broadcast %cst_4 : f32 to vector<32x128xf32>
    %8 = arith.mulf %6, %7 : vector<32x128xf32>
    %9 = math.exp %8 : vector<32x128xf32>
    %10 = tpu.iota {dimensions = array<i32: 1>} : vector<32x128xi32>
    %c0_i32 = arith.constant 0 : i32
    %cst_5 = arith.constant dense<0xFF800000> : vector<32xf32>
    %11 = vector.multi_reduction <maximumf>, %2, %cst_5 [1] : vector<32x128xf32> to vector<32xf32>
    %12 = vector.shape_cast %11 : vector<32xf32> to vector<32x1xf32>
    %13 = vector.broadcast %12 : vector<32x1xf32> to vector<32x128xf32>
    %14 = arith.cmpf oeq, %2, %13 : vector<32x128xf32>
    %c128_i32 = arith.constant 128 : i32
    %15 = vector.broadcast %c128_i32 : i32 to vector<32x128xi32>
    %16 = arith.select %14, %10, %15 : vector<32x128xi1>, vector<32x128xi32>
    %cst_6 = arith.constant dense<2147483647> : vector<32xi32>
    %17 = vector.multi_reduction <minsi>, %16, %cst_6 [1] : vector<32x128xi32> to vector<32xi32>
    %18 = vector.shape_cast %17 : vector<32xi32> to vector<32x1xi32>
    %19 = vector.broadcast %18 : vector<32x1xi32> to vector<32x128xi32>
    %20 = arith.cmpi eq, %10, %19 : vector<32x128xi32>
    %cst_7 = arith.constant -1.000000e+30 : f32
    %21 = vector.broadcast %cst_7 : f32 to vector<32x128xf32>
    %22 = arith.select %20, %21, %2 : vector<32x128xi1>, vector<32x128xf32>
    %c1_i32 = arith.constant 1 : i32
    %cst_8 = arith.constant dense<0xFF800000> : vector<32xf32>
    %23 = vector.multi_reduction <maximumf>, %22, %cst_8 [1] : vector<32x128xf32> to vector<32xf32>
    %24 = vector.shape_cast %23 : vector<32xf32> to vector<32x1xf32>
    %25 = vector.broadcast %24 : vector<32x1xf32> to vector<32x128xf32>
    %26 = arith.cmpf oeq, %22, %25 : vector<32x128xf32>
    %c128_i32_9 = arith.constant 128 : i32
    %27 = vector.broadcast %c128_i32_9 : i32 to vector<32x128xi32>
    %28 = arith.select %26, %10, %27 : vector<32x128xi1>, vector<32x128xi32>
    %cst_10 = arith.constant dense<2147483647> : vector<32xi32>
    %29 = vector.multi_reduction <minsi>, %28, %cst_10 [1] : vector<32x128xi32> to vector<32xi32>
    %30 = vector.shape_cast %29 : vector<32xi32> to vector<32x1xi32>
    %31 = vector.broadcast %30 : vector<32x1xi32> to vector<32x128xi32>
    %32 = arith.cmpi eq, %10, %31 : vector<32x128xi32>
    %cst_11 = arith.constant -1.000000e+30 : f32
    %33 = vector.broadcast %cst_11 : f32 to vector<32x128xf32>
    %34 = arith.select %32, %33, %22 : vector<32x128xi1>, vector<32x128xf32>
    %c2_i32 = arith.constant 2 : i32
    %cst_12 = arith.constant dense<0xFF800000> : vector<32xf32>
    %35 = vector.multi_reduction <maximumf>, %34, %cst_12 [1] : vector<32x128xf32> to vector<32xf32>
    %36 = vector.shape_cast %35 : vector<32xf32> to vector<32x1xf32>
    %37 = vector.broadcast %36 : vector<32x1xf32> to vector<32x128xf32>
    %38 = arith.cmpf oeq, %34, %37 : vector<32x128xf32>
    %c128_i32_13 = arith.constant 128 : i32
    %39 = vector.broadcast %c128_i32_13 : i32 to vector<32x128xi32>
    %40 = arith.select %38, %10, %39 : vector<32x128xi1>, vector<32x128xi32>
    %cst_14 = arith.constant dense<2147483647> : vector<32xi32>
    %41 = vector.multi_reduction <minsi>, %40, %cst_14 [1] : vector<32x128xi32> to vector<32xi32>
    %42 = vector.shape_cast %41 : vector<32xi32> to vector<32x1xi32>
    %43 = vector.broadcast %42 : vector<32x1xi32> to vector<32x128xi32>
    %44 = arith.cmpi eq, %10, %43 : vector<32x128xi32>
    %cst_15 = arith.constant -1.000000e+30 : f32
    %45 = vector.broadcast %cst_15 : f32 to vector<32x128xf32>
    %46 = arith.select %44, %45, %34 : vector<32x128xi1>, vector<32x128xf32>
    %c3_i32 = arith.constant 3 : i32
    %cst_16 = arith.constant dense<0xFF800000> : vector<32xf32>
    %47 = vector.multi_reduction <maximumf>, %46, %cst_16 [1] : vector<32x128xf32> to vector<32xf32>
    %48 = vector.shape_cast %47 : vector<32xf32> to vector<32x1xf32>
    %49 = vector.broadcast %48 : vector<32x1xf32> to vector<32x128xf32>
    %50 = arith.cmpf oeq, %46, %49 : vector<32x128xf32>
    %c128_i32_17 = arith.constant 128 : i32
    %51 = vector.broadcast %c128_i32_17 : i32 to vector<32x128xi32>
    %52 = arith.select %50, %10, %51 : vector<32x128xi1>, vector<32x128xi32>
    %cst_18 = arith.constant dense<2147483647> : vector<32xi32>
    %53 = vector.multi_reduction <minsi>, %52, %cst_18 [1] : vector<32x128xi32> to vector<32xi32>
    %54 = vector.shape_cast %53 : vector<32xi32> to vector<32x1xi32>
    %55 = vector.broadcast %54 : vector<32x1xi32> to vector<32x128xi32>
    %56 = arith.cmpi eq, %10, %55 : vector<32x128xi32>
    %cst_19 = arith.constant -1.000000e+30 : f32
    %57 = vector.broadcast %cst_19 : f32 to vector<32x128xf32>
    %58 = arith.select %56, %57, %46 : vector<32x128xi1>, vector<32x128xf32>
    %c4_i32 = arith.constant 4 : i32
    %cst_20 = arith.constant dense<0xFF800000> : vector<32xf32>
    %59 = vector.multi_reduction <maximumf>, %58, %cst_20 [1] : vector<32x128xf32> to vector<32xf32>
    %60 = vector.shape_cast %59 : vector<32xf32> to vector<32x1xf32>
    %61 = vector.broadcast %60 : vector<32x1xf32> to vector<32x128xf32>
    %62 = arith.cmpf oeq, %58, %61 : vector<32x128xf32>
    %c128_i32_21 = arith.constant 128 : i32
    %63 = vector.broadcast %c128_i32_21 : i32 to vector<32x128xi32>
    %64 = arith.select %62, %10, %63 : vector<32x128xi1>, vector<32x128xi32>
    %cst_22 = arith.constant dense<2147483647> : vector<32xi32>
    %65 = vector.multi_reduction <minsi>, %64, %cst_22 [1] : vector<32x128xi32> to vector<32xi32>
    %66 = vector.shape_cast %65 : vector<32xi32> to vector<32x1xi32>
    %67 = vector.broadcast %66 : vector<32x1xi32> to vector<32x128xi32>
    %68 = arith.cmpi eq, %10, %67 : vector<32x128xi32>
    %cst_23 = arith.constant -1.000000e+30 : f32
    %69 = vector.broadcast %cst_23 : f32 to vector<32x128xf32>
    %70 = arith.select %68, %69, %58 : vector<32x128xi1>, vector<32x128xf32>
    %c5_i32 = arith.constant 5 : i32
    %cst_24 = arith.constant dense<0xFF800000> : vector<32xf32>
    %71 = vector.multi_reduction <maximumf>, %70, %cst_24 [1] : vector<32x128xf32> to vector<32xf32>
    %72 = vector.shape_cast %71 : vector<32xf32> to vector<32x1xf32>
    %73 = vector.broadcast %72 : vector<32x1xf32> to vector<32x128xf32>
    %74 = arith.cmpf oeq, %70, %73 : vector<32x128xf32>
    %c128_i32_25 = arith.constant 128 : i32
    %75 = vector.broadcast %c128_i32_25 : i32 to vector<32x128xi32>
    %76 = arith.select %74, %10, %75 : vector<32x128xi1>, vector<32x128xi32>
    %cst_26 = arith.constant dense<2147483647> : vector<32xi32>
    %77 = vector.multi_reduction <minsi>, %76, %cst_26 [1] : vector<32x128xi32> to vector<32xi32>
    %78 = vector.shape_cast %77 : vector<32xi32> to vector<32x1xi32>
    %79 = vector.broadcast %78 : vector<32x1xi32> to vector<32x128xi32>
    %80 = arith.cmpi eq, %10, %79 : vector<32x128xi32>
    %cst_27 = arith.constant -1.000000e+30 : f32
    %81 = vector.broadcast %cst_27 : f32 to vector<32x128xf32>
    %82 = arith.select %80, %81, %70 : vector<32x128xi1>, vector<32x128xf32>
    %cst_28 = arith.constant -5.000000e+29 : f32
    %83 = vector.broadcast %cst_28 : f32 to vector<32x128xf32>
    %84 = arith.cmpf olt, %82, %83 : vector<32x128xf32>
    %cst_29 = arith.constant 1.000000e+30 : f32
    %85 = vector.broadcast %cst_29 : f32 to vector<32x128xf32>
    %86 = arith.select %84, %85, %82 : vector<32x128xi1>, vector<32x128xf32>
    %c0_i32_30 = arith.constant 0 : i32
    %cst_31 = arith.constant dense<0x7F800000> : vector<32xf32>
    %87 = vector.multi_reduction <minimumf>, %86, %cst_31 [1] : vector<32x128xf32> to vector<32xf32>
    %88 = vector.shape_cast %87 : vector<32xf32> to vector<32x1xf32>
    %89 = vector.broadcast %88 : vector<32x1xf32> to vector<32x128xf32>
    %90 = arith.cmpf oeq, %86, %89 : vector<32x128xf32>
    %c128_i32_32 = arith.constant 128 : i32
    %91 = vector.broadcast %c128_i32_32 : i32 to vector<32x128xi32>
    %92 = arith.select %90, %10, %91 : vector<32x128xi1>, vector<32x128xi32>
    %cst_33 = arith.constant dense<2147483647> : vector<32xi32>
    %93 = vector.multi_reduction <minsi>, %92, %cst_33 [1] : vector<32x128xi32> to vector<32xi32>
    %94 = vector.shape_cast %93 : vector<32xi32> to vector<32x1xi32>
    %95 = vector.broadcast %94 : vector<32x1xi32> to vector<32x128xi32>
    %96 = arith.cmpi eq, %10, %95 : vector<32x128xi32>
    %cst_34 = arith.constant 1.000000e+30 : f32
    %97 = vector.broadcast %cst_34 : f32 to vector<32x128xf32>
    %98 = arith.select %96, %97, %86 : vector<32x128xi1>, vector<32x128xf32>
    %c1_i32_35 = arith.constant 1 : i32
    %cst_36 = arith.constant dense<0x7F800000> : vector<32xf32>
    %99 = vector.multi_reduction <minimumf>, %98, %cst_36 [1] : vector<32x128xf32> to vector<32xf32>
    %100 = vector.shape_cast %99 : vector<32xf32> to vector<32x1xf32>
    %101 = vector.broadcast %100 : vector<32x1xf32> to vector<32x128xf32>
    %102 = arith.cmpf oeq, %98, %101 : vector<32x128xf32>
    %c128_i32_37 = arith.constant 128 : i32
    %103 = vector.broadcast %c128_i32_37 : i32 to vector<32x128xi32>
    %104 = arith.select %102, %10, %103 : vector<32x128xi1>, vector<32x128xi32>
    %cst_38 = arith.constant dense<2147483647> : vector<32xi32>
    %105 = vector.multi_reduction <minsi>, %104, %cst_38 [1] : vector<32x128xi32> to vector<32xi32>
    %106 = vector.shape_cast %105 : vector<32xi32> to vector<32x1xi32>
    %107 = vector.broadcast %106 : vector<32x1xi32> to vector<32x128xi32>
    %108 = arith.cmpi eq, %10, %107 : vector<32x128xi32>
    %cst_39 = arith.constant 1.000000e+30 : f32
    %109 = vector.broadcast %cst_39 : f32 to vector<32x128xf32>
    %110 = arith.select %108, %109, %98 : vector<32x128xi1>, vector<32x128xf32>
    %c2_i32_40 = arith.constant 2 : i32
    %cst_41 = arith.constant dense<0x7F800000> : vector<32xf32>
    %111 = vector.multi_reduction <minimumf>, %110, %cst_41 [1] : vector<32x128xf32> to vector<32xf32>
    %112 = vector.shape_cast %111 : vector<32xf32> to vector<32x1xf32>
    %113 = vector.broadcast %112 : vector<32x1xf32> to vector<32x128xf32>
    %114 = arith.cmpf oeq, %110, %113 : vector<32x128xf32>
    %c128_i32_42 = arith.constant 128 : i32
    %115 = vector.broadcast %c128_i32_42 : i32 to vector<32x128xi32>
    %116 = arith.select %114, %10, %115 : vector<32x128xi1>, vector<32x128xi32>
    %cst_43 = arith.constant dense<2147483647> : vector<32xi32>
    %117 = vector.multi_reduction <minsi>, %116, %cst_43 [1] : vector<32x128xi32> to vector<32xi32>
    %118 = vector.shape_cast %117 : vector<32xi32> to vector<32x1xi32>
    %119 = vector.broadcast %118 : vector<32x1xi32> to vector<32x128xi32>
    %120 = arith.cmpi eq, %10, %119 : vector<32x128xi32>
    %cst_44 = arith.constant 1.000000e+30 : f32
    %121 = vector.broadcast %cst_44 : f32 to vector<32x128xf32>
    %122 = arith.select %120, %121, %110 : vector<32x128xi1>, vector<32x128xf32>
    %c3_i32_45 = arith.constant 3 : i32
    %cst_46 = arith.constant dense<0x7F800000> : vector<32xf32>
    %123 = vector.multi_reduction <minimumf>, %122, %cst_46 [1] : vector<32x128xf32> to vector<32xf32>
    %124 = vector.shape_cast %123 : vector<32xf32> to vector<32x1xf32>
    %125 = vector.broadcast %124 : vector<32x1xf32> to vector<32x128xf32>
    %126 = arith.cmpf oeq, %122, %125 : vector<32x128xf32>
    %c128_i32_47 = arith.constant 128 : i32
    %127 = vector.broadcast %c128_i32_47 : i32 to vector<32x128xi32>
    %128 = arith.select %126, %10, %127 : vector<32x128xi1>, vector<32x128xi32>
    %cst_48 = arith.constant dense<2147483647> : vector<32xi32>
    %129 = vector.multi_reduction <minsi>, %128, %cst_48 [1] : vector<32x128xi32> to vector<32xi32>
    %130 = vector.shape_cast %129 : vector<32xi32> to vector<32x1xi32>
    %131 = vector.broadcast %130 : vector<32x1xi32> to vector<32x128xi32>
    %132 = arith.cmpi eq, %10, %131 : vector<32x128xi32>
    %cst_49 = arith.constant 1.000000e+30 : f32
    %133 = vector.broadcast %cst_49 : f32 to vector<32x128xf32>
    %134 = arith.select %132, %133, %122 : vector<32x128xi1>, vector<32x128xf32>
    %c4_i32_50 = arith.constant 4 : i32
    %cst_51 = arith.constant dense<0x7F800000> : vector<32xf32>
    %135 = vector.multi_reduction <minimumf>, %134, %cst_51 [1] : vector<32x128xf32> to vector<32xf32>
    %136 = vector.shape_cast %135 : vector<32xf32> to vector<32x1xf32>
    %137 = vector.broadcast %136 : vector<32x1xf32> to vector<32x128xf32>
    %138 = arith.cmpf oeq, %134, %137 : vector<32x128xf32>
    %c128_i32_52 = arith.constant 128 : i32
    %139 = vector.broadcast %c128_i32_52 : i32 to vector<32x128xi32>
    %140 = arith.select %138, %10, %139 : vector<32x128xi1>, vector<32x128xi32>
    %cst_53 = arith.constant dense<2147483647> : vector<32xi32>
    %141 = vector.multi_reduction <minsi>, %140, %cst_53 [1] : vector<32x128xi32> to vector<32xi32>
    %142 = vector.shape_cast %141 : vector<32xi32> to vector<32x1xi32>
    %143 = vector.broadcast %142 : vector<32x1xi32> to vector<32x128xi32>
    %144 = arith.cmpi eq, %10, %143 : vector<32x128xi32>
    %cst_54 = arith.constant 1.000000e+30 : f32
    %145 = vector.broadcast %cst_54 : f32 to vector<32x128xf32>
    %146 = arith.select %144, %145, %134 : vector<32x128xi1>, vector<32x128xf32>
    %c5_i32_55 = arith.constant 5 : i32
    %cst_56 = arith.constant dense<0x7F800000> : vector<32xf32>
    %147 = vector.multi_reduction <minimumf>, %146, %cst_56 [1] : vector<32x128xf32> to vector<32xf32>
    %148 = vector.shape_cast %147 : vector<32xf32> to vector<32x1xf32>
    %149 = vector.broadcast %148 : vector<32x1xf32> to vector<32x128xf32>
    %150 = arith.cmpf oeq, %146, %149 : vector<32x128xf32>
    %c128_i32_57 = arith.constant 128 : i32
    %151 = vector.broadcast %c128_i32_57 : i32 to vector<32x128xi32>
    %152 = arith.select %150, %10, %151 : vector<32x128xi1>, vector<32x128xi32>
    %cst_58 = arith.constant dense<2147483647> : vector<32xi32>
    %153 = vector.multi_reduction <minsi>, %152, %cst_58 [1] : vector<32x128xi32> to vector<32xi32>
    %154 = vector.shape_cast %153 : vector<32xi32> to vector<32x1xi32>
    %155 = vector.broadcast %154 : vector<32x1xi32> to vector<32x128xi32>
    %156 = arith.cmpi eq, %10, %155 : vector<32x128xi32>
    %cst_59 = arith.constant 1.000000e+30 : f32
    %157 = vector.broadcast %cst_59 : f32 to vector<32x128xf32>
    %158 = arith.select %156, %157, %146 : vector<32x128xi1>, vector<32x128xf32>
    %cst_60 = arith.constant 5.000000e+29 : f32
    %159 = vector.broadcast %cst_60 : f32 to vector<32x128xf32>
    %160 = arith.cmpf olt, %158, %159 : vector<32x128xf32>
    %cst_61 = arith.constant 0.000000e+00 : f32
    %161 = vector.broadcast %cst_61 : f32 to vector<32x128xf32>
    %162 = arith.select %160, %9, %161 : vector<32x128xi1>, vector<32x128xf32>
    %cst_62 = arith.constant dense<0.000000e+00> : vector<32xf32>
    %163 = vector.multi_reduction <add>, %162, %cst_62 [1] : vector<32x128xf32> to vector<32xf32>
    %164 = vector.shape_cast %163 : vector<32xf32> to vector<32x1xf32>
    %c0_63 = arith.constant 0 : index
    %c0_64 = arith.constant 0 : index
    %165 = vector.load %arg2[%c0_63, %c0_64] : memref<32x32xf32, #tpu.memory_space<vmem>>, vector<32x32xf32>
    %166 = arith.mulf %0, %165 : vector<32x32xf32>
    %cst_65 = arith.constant dense<0.000000e+00> : vector<32xf32>
    %167 = vector.multi_reduction <add>, %166, %cst_65 [1] : vector<32x32xf32> to vector<32xf32>
    %168 = vector.shape_cast %167 : vector<32xf32> to vector<32x1xf32>
    %169 = math.log %164 : vector<32x1xf32>
    %170 = arith.subf %4, %168 : vector<32x1xf32>
    %cst_66 = arith.constant 2.000000e+00 : f32
    %171 = vector.broadcast %cst_66 : f32 to vector<32x1xf32>
    %172 = arith.mulf %170, %171 : vector<32x1xf32>
    %173 = arith.addf %169, %172 : vector<32x1xf32>
    %cst_67 = arith.constant 5.000000e-01 : f32
    %174 = vector.broadcast %cst_67 : f32 to vector<32x1xf32>
    %175 = arith.mulf %174, %173 : vector<32x1xf32>
    %176 = vector.shape_cast %175 : vector<32x1xf32> to vector<1x32x1xf32>
    %cst_68 = arith.constant dense<0.000000e+00> : vector<1xf32>
    %177 = vector.multi_reduction <add>, %176, %cst_68 [1, 2] : vector<1x32x1xf32> to vector<1xf32>
    %178 = vector.shape_cast %177 : vector<1xf32> to vector<1x1x1xf32>
    %179 = vector.extract %178[0, 0, 0] : f32 from vector<1x1x1xf32>
    %180 = vector.broadcast %179 : f32 to vector<8x128xf32>
    %c0_69 = arith.constant 0 : index
    %c0_70 = arith.constant 0 : index
    %181 = vector.load %arg4[%c0_69, %c0_70] : memref<8x128xf32, #tpu.memory_space<vmem>>, vector<8x128xf32>
    tpu.vector_store %arg4[%c0_69, %c0_70], %180 {strides = array<i32>} : memref<8x128xf32, #tpu.memory_space<vmem>>, vector<8x128xf32>,
    return
  }
  func.func @transform_0(%arg0: i32) -> (i32, i32) {
    %c0_i32 = arith.constant 0 : i32
    %c0_i32_0 = arith.constant 0 : i32
    return %arg0, %c0_i32 : i32, i32
  }
  func.func @transform_1(%arg0: i32) -> (i32, i32) {
    %c0_i32 = arith.constant 0 : i32
    %c0_i32_0 = arith.constant 0 : i32
    return %arg0, %c0_i32 : i32, i32
  }
  func.func @transform_2(%arg0: i32) -> (i32, i32) {
    %c0_i32 = arith.constant 0 : i32
    %c0_i32_0 = arith.constant 0 : i32
    %c0_i32_1 = arith.constant 0 : i32
    return %c0_i32, %c0_i32_0 : i32, i32
  }
  func.func @transform_3(%arg0: i32) -> (i32, i32) {
    %c0_i32 = arith.constant 0 : i32
    %c0_i32_0 = arith.constant 0 : i32
    return %arg0, %c0_i32 : i32, i32
  }
}

</mosaic_0001>

<bundles_post_ra>
// kernel: tpu_custom_call.1
= control target key start
LH: loop header
LB: loop body
LE: loop exit
PB: predicated region body
PF: predicated region fallthrough
CT: control target
= control target key end

     0   :  { %8 = vsyncpa [#allocation3], 0  ;;  %s2148_s0 = inlined_call_operand.vmem [shape: f32[128,32], index: 0, kind: input, shape index: {}]   ;;  %s2149_s1 = inlined_call_operand.vmem [shape: f32[128,32], index: 1, kind: input, shape index: {}]   ;;  %s2150_s2 = inlined_call_operand.vmem [shape: f32[32,128], index: 2, kind: input, shape index: {}]   ;;  %s2151_s3 = inlined_call_operand.hbm [shape: f32[32,128], index: 3, kind: output, shape index: {}]  }
   0x1   :  { %10 = vsyncpa [#allocation3 + $0x1], 0  ;;  %s1644_s12 = smov 0   ;;  %s1646_s13 = smov 0  }
   0x2   :  { %s1648_s14 = smov 0   ;;  %s1650_s15 = smov 0  }
   0x3 LB: > { %s1665_s16 = sadd.s32 4294967295, %s1621_s15   ;;  %s1449_s17 = sadd.s32 4294967294, %s1621_s15   ;;  %s1621_s15 = sphi %s1650_s15, %s2157_s15   ;;  %s1617_s14 = sphi %s1648_s14, %s2156_s14   ;;  %s1613_s13 = sphi %s1646_s13, %s2155_s13   ;;  %s1609_s12 = sphi %s1644_s12, %s2154_s12  }
   0x4   : > { %s1669_s18 = sadd.s32 1, %s1621_s15   ;;  %s96_s19 = sadd.s32 1, %s1617_s14 }
   0x5   : > { %s93_s20 = ssub.s32 %s1621_s15, %s1669_s18  ;;  %p106_p0 = scmp.ne.s32.totalorder %s1617_s14, %s1613_s13 }
   0x6   : > { %p94_p1 = scmp.eq.s32.totalorder %s93_s20, 0  ;;  %p107_p2 = scmp.eq.s32.totalorder %s1665_s16, 3 }
   0x7   : > { %p112_p3 = scmp.ne.s32.totalorder %s1613_s13, %s1609_s12  ;;  %p113_p4 = scmp.eq.s32.totalorder %s1449_s17, 3 }
   0x8   : > { %s1680_s21 = scalar_select %p94_p1, %s1617_s14, %s96_s19  }
   0x9   : > { %p1682_p5 = por %p107_p2, %p106_p0  ;;  %p1686_p6 = por %p113_p4, %p112_p3 }
   0xa   : > { %p1452_p7 = scmp.ge.s32.totalorder %s1621_s15, 1  ;;  %p152_p8 = scmp.lt.s32.totalorder %s1621_s15, 5 }
   0xc   : > { %p153_p9 = pnand %p1452_p7, %p152_p8 }
   0xd   : > { %v197_v0 = vld [vmem:[%s2150_s2] sm:$0xff] (!%p153_p9)  ;;  %v198_v1 = vld [vmem:[%s2150_s2 + $0x8] sm:$0xff] (!%p153_p9)  ;;  %v199_v2 = vld [vmem:[%s2150_s2 + $0x10] sm:$0xff] (!%p153_p9)  ;;  %s1454_s30 = sshll.u32 (!%p153_p9), %s1665_s16, 2  ;;  %vm201_vm0 = vcmask (!%p153_p9), 261120   ;;  %v323_v18 = vlaneseq (!%p153_p9)  ;;  %s178_s19 = sand.u32 (!%p153_p9), 1, %s1613_s13  }
   0xe   : > { %156 = sbr.rel (%p153_p9) target bundleno = 5912 (0x1718), region = 32  ;;  %v1488_v3 = vpack.c.bf16 (!%p153_p9), %v198_v1, %v197_v0  ;;  %v200_v4 = vld [vmem:[%s2150_s2 + $0x18] sm:$0xff] (!%p153_p9)  ;;  %p182_p10 = scmp.lt.s32.totalorder (!%p153_p9), %s1454_s30, 15 }
   0xf   : > { %v1492_v5 = vpack.c.bf16 (!%p153_p9), %v200_v4, %v199_v2  ;;  %v1741_v19 = vand.u32 (!%p153_p9), 127, %v323_v18  ;;  %s1453_s20 = sshll.u32 (!%p153_p9), %s178_s19, 3  ;;  %s1463_s26 = sshll.u32 (!%p153_p9), %s1665_s16, 7 }
  0x10   : > { %1489 = vmatprep.subr.bf16.mxu0 (!%p153_p9), %v1488_v3  ;;  %1496 = vmatprep.subr.bf16.mxu1 (!%p153_p9), %v1488_v3  ;;  %s180_s24 = scalar_lea.vmem (!%p153_p9), [#allocation2], %s1453_s20  ;;  %s1365_s4 = scalar_lea.sflag (!%p153_p9), [#allocation3], %s178_s19 }
  0x11   : > { %1491 = vmatpush3.bf16.msra.mxu0 (!%p153_p9), %v1488_v3  ;;  %1498 = vmatpush3.bf16.msra.mxu1 (!%p153_p9), %v1488_v3  ;;  %s1378_s25 = sshll.u32 (!%p153_p9), %s180_s24, 4  ;;  %s1623_s16 = smov (!%p153_p9), [#allocation2]   ;;  %s2103_s25 = int_to_ptr.vmem [resolvable:$true] %s1378_s25 }
  0x12   : > { %1493 = vmatprep.subr.bf16.mxu0 (!%p153_p9), %v1492_v5  ;;  %1497 = vmatprep.subr.bf16.mxu1 (!%p153_p9), %v1492_v5  ;;  %s1559_s5 = scalar_lea.vmem (!%p153_p9), %s2103_s25, 128 }
  0x13   : > { %p1560_p11 = scmp.ne.s32.totalorder (!%p153_p9), %s2103_s25, %s1559_s5 }
  0x15   : > { %s2159_s30 = smov (!%p182_p10, %s1454_s30), 15  ;;  %1495 = vmatpush3.bf16.msra.mxu0 %v1492_v5  ;;  %1499 = vmatpush3.bf16.msra.mxu1 %v1492_v5  ;;  %p1561_p12 = pnand %p1560_p11, %p1682_p5 }
  0x16   : > { %s1455_s6 = sshll.u32 %s2159_s30, 3  ;;  %s2108_s30 = scalar_lea.hbm %s2151_s3, %s1463_s26 }
  0x17   : > { %s1708_s9 = scalar_lea.vmem %s2148_s0, %s1455_s6  ;;  %s1713_s17 = scalar_lea.vmem %s2149_s1, %s1455_s6 }
  0x18   : > { %v193_v6 = vld [vmem:[%s1708_s9] sm:$0xff]  ;;  %v195_v8 = vld [vmem:[%s1708_s9 + $0x10] sm:$0xff]  ;;  %v194_v11 = vld [vmem:[%s1708_s9 + $0x8] sm:$0xff]  ;;  %p1562_p13 = pneg %p1561_p12  ;;  %s1563_s6 = sshll.u32 %s1623_s16, 4  ;;  %s1564_s6 = int_to_ptr.vmem [resolvable:$false] %s1563_s6 }
  0x19   : > { %v1301_v7 = vld [vmem:[%s1713_s17] sm:$0xff]  ;;  %v1303_v10 = vld [vmem:[%s1713_s17 + $0x10] sm:$0xff]  ;;  %v196_v12 = vld [vmem:[%s1708_s9 + $0x18] sm:$0xff]  ;;  %1482 = vmatprep.mubr.msk.f32.mxu0 %vm201_vm0, %v193_v6  ;;  %1485 = vmatprep.mubr.msk.f32.mxu1 %vm201_vm0, %v195_v8  ;;  %s1565_s7 = scalar_lea.vmem %s1564_s6, 256  ;;  %p1566_p0 = scmp.lt.s32.totalorder %s2103_s25, %s1564_s6 }
  0x1a   : > { %v1718_v9 = vmul.f32 %v1301_v7, %v193_v6  ;;  %v1725_v13 = vmul.f32 %v1303_v10, %v195_v8  ;;  %1483 = vmatmul.mubr.msk.f32.vlgmr.msra.gmra.mrb[0].mxu0 %vm201_vm0, %v194_v11  ;;  %1486 = vmatmul.mubr.msk.f32.vlgmr.msra.gmra.mrb[0].mxu1 %vm201_vm0, %v196_v12  ;;  %p1567_p1 = scmp.lt.s32.totalorder %s1565_s7, %s1559_s5 }
  0x1c   : > { %p1568_p2 = por %p1567_p1, %p1566_p0 }
  0x1e   : > { %p1569_p3 = pnand %p1568_p2, %p1562_p13 }
  0xed   : > { %v1729_v14 = vpop.f32.mrb[0].mxu0  ;;  %v1731_v15 = vpop.f32.mrb[0].mxu1 }
  0xee   : > { %v1733_v16 = vpop.f32.mrb[1].mxu0  ;;  %v1735_v17 = vpop.f32.mrb[1].mxu1 }
  0xef   : > { %303 = vmax.xlane.f32.xlu1 %v1735_v17  ;;  %299 = vmax.xlane.f32.xlu0 %v1733_v16 }
  0xf3   : > { %305 = vmax.xlane.f32.xlu1 %v1731_v15  ;;  %301 = vmax.xlane.f32.xlu0 %v1729_v14 }
 0x17c   : > { %v1743_v20 = vpop.xlane.xlu1 %303  ;;  %v1745_v21 = vpop.xlane.xlu0 %299 }
 0x17d   : > { %vm325_vm1 = vcmp.eq.f32.partialorder %v1733_v16, %v1745_v21  ;;  %vm327_vm2 = vcmp.eq.f32.partialorder %v1735_v17, %v1743_v20 }
 0x17e   : > { %v329_v22 = vsel %vm325_vm1, %v1741_v19, 128  ;;  %v331_v24 = vsel %vm327_vm2, %v1741_v19, 128 }
 0x17f   : > { %v334_v23 = vshra.s32 %v329_v22, 16  ;;  %v362_v28 = vshra.s32 %v331_v24, 16  ;;  %v333_v36 = vand.u32 65535, %v329_v22  ;;  %v361_v40 = vand.u32 65535, %v331_v24 }
 0x180   : > { %v1753_v25 = vpop.xlane.xlu1 %305  ;;  %v1755_v26 = vpop.xlane.xlu0 %301 }
 0x181   : > { %v336_v27 = vcvt.s32.f32 %v334_v23  ;;  %vm326_vm3 = vcmp.eq.f32.partialorder %v1729_v14, %v1755_v26  ;;  %vm328_vm4 = vcmp.eq.f32.partialorder %v1731_v15, %v1753_v25  ;;  %v364_v32 = vcvt.s32.f32 %v362_v28 }
 0x182   : > { %v330_v29 = vsel %vm326_vm3, %v1741_v19, 128  ;;  %v332_v31 = vsel %vm328_vm4, %v1741_v19, 128  ;;  %v335_v38 = vcvt.s32.f32 %v333_v36  ;;  %v363_v45 = vcvt.s32.f32 %v361_v40 }
 0x183   : > { %337 = vmin.xlane.f32.xlu0 %v336_v27  ;;  %v348_v30 = vshra.s32 %v330_v29, 16  ;;  %v376_v34 = vshra.s32 %v332_v31, 16  ;;  %v347_v39 = vand.u32 65535, %v330_v29  ;;  %v375_v46 = vand.u32 65535, %v332_v31 }
 0x185   : > { %v350_v33 = vcvt.s32.f32 %v348_v30  ;;  %v378_v35 = vcvt.s32.f32 %v376_v34  ;;  %v349_v44 = vcvt.s32.f32 %v347_v39  ;;  %v377_v50 = vcvt.s32.f32 %v375_v46 }
 0x187   : > { %365 = vmin.xlane.f32.xlu0 %v364_v32  ;;  %351 = vmin.xlane.f32.xlu1 %v350_v33 }
 0x18b   : > { %379 = vmin.xlane.f32.xlu1 %v378_v35 }
 0x210   : > { %v338_v37 = vpop.xlane.xlu0 %337 }
 0x211   : > { %vm339_vm5 = vcmp.eq.f32.partialorder %v336_v27, %v338_v37  ;;  %v344_v52 = vcvt.f32.s32 %v338_v37 }
 0x212   : > { %v340_v41 = vsel %vm339_vm5, %v335_v38, inf }
 0x213   : > { %341 = vmin.xlane.f32.xlu0 %v340_v41  ;;  %v345_v56 = vshll.u32 %v344_v52, 16 }
 0x214   : > { %v352_v42 = vpop.xlane.xlu1 %351  ;;  %v366_v43 = vpop.xlane.xlu0 %365 }
 0x215   : > { %vm353_vm6 = vcmp.eq.f32.partialorder %v350_v33, %v352_v42  ;;  %vm367_vm7 = vcmp.eq.f32.partialorder %v364_v32, %v366_v43  ;;  %v358_v53 = vcvt.f32.s32 %v352_v42  ;;  %v372_v54 = vcvt.f32.s32 %v366_v43 }
 0x216   : > { %v354_v47 = vsel %vm353_vm6, %v349_v44, inf  ;;  %v368_v48 = vsel %vm367_vm7, %v363_v45, inf }
 0x217   : > { %355 = vmin.xlane.f32.xlu1 %v354_v47  ;;  %369 = vmin.xlane.f32.xlu0 %v368_v48  ;;  %v359_v59 = vshll.u32 %v358_v53, 16  ;;  %v373_v60 = vshll.u32 %v372_v54, 16 }
 0x218   : > { %v380_v49 = vpop.xlane.xlu1 %379 }
 0x219   : > { %vm381_vm8 = vcmp.eq.f32.partialorder %v378_v35, %v380_v49  ;;  %v386_v63 = vcvt.f32.s32 %v380_v49 }
 0x21a   : > { %v382_v51 = vsel %vm381_vm8, %v377_v50, inf }
 0x21b   : > { %383 = vmin.xlane.f32.xlu1 %v382_v51  ;;  %v387_v6 = vshll.u32 %v386_v63, 16 }
 0x2a0   : > { %v342_v55 = vpop.xlane.xlu0 %341 }
 0x2a1   : > { %v343_v57 = vcvt.f32.s32 %v342_v55 }
 0x2a3   : > { %v346_v58 = vadd.s32 %v345_v56, %v343_v57 }
 0x2a4   : > { %v356_v61 = vpop.xlane.xlu1 %355  ;;  %v370_v62 = vpop.xlane.xlu0 %369 }
 0x2a5   : > { %v357_v0 = vcvt.f32.s32 %v356_v61  ;;  %v371_v1 = vcvt.f32.s32 %v370_v62  ;;  %vm389_vm9 = vcmp.eq.s32.totalorder %v1741_v19, %v346_v58 }
 0x2a6   : > { %v1765_v2 = vsel %vm389_vm9, -1e+30, %v1733_v16 }
 0x2a7   : > { %v360_v3 = vadd.s32 %v359_v59, %v357_v0  ;;  %v374_v4 = vadd.s32 %v373_v60, %v371_v1  ;;  %397 = vmax.xlane.f32.xlu0 %v1765_v2 }
 0x2a8   : > { %v384_v5 = vpop.xlane.xlu1 %383 }
 0x2a9   : > { %v385_v7 = vcvt.f32.s32 %v384_v5  ;;  %vm390_vm10 = vcmp.eq.s32.totalorder %v1741_v19, %v360_v3  ;;  %vm391_vm11 = vcmp.eq.s32.totalorder %v1741_v19, %v374_v4 }
 0x2aa   : > { %v1771_v8 = vsel %vm390_vm10, -1e+30, %v1729_v14  ;;  %v1774_v10 = vsel %vm391_vm11, -1e+30, %v1735_v17 }
 0x2ab   : > { %v388_v11 = vadd.s32 %v387_v6, %v385_v7  ;;  %399 = vmax.xlane.f32.xlu1 %v1771_v8  ;;  %401 = vmax.xlane.f32.xlu0 %v1774_v10 }
 0x2ad   : > { %vm392_vm12 = vcmp.eq.s32.totalorder %v1741_v19, %v388_v11 }
 0x2ae   : > { %v1780_v12 = vsel %vm392_vm12, -1e+30, %v1731_v15 }
 0x2af   : > { %403 = vmax.xlane.f32.xlu1 %v1780_v12 }
 0x334   : > { %v398_v18 = vpop.xlane.xlu0 %397 }
 0x335   : > { %vm405_vm13 = vcmp.eq.f32.partialorder %v1765_v2, %v398_v18 }
 0x336   : > { %v409_v22 = vsel %vm405_vm13, %v1741_v19, 128 }
 0x337   : > { %v414_v23 = vshra.s32 %v409_v22, 16  ;;  %v413_v39 = vand.u32 65535, %v409_v22 }
 0x338   : > { %v400_v24 = vpop.xlane.xlu1 %399  ;;  %v402_v27 = vpop.xlane.xlu0 %401 }
 0x339   : > { %vm406_vm14 = vcmp.eq.f32.partialorder %v1771_v8, %v400_v24  ;;  %vm407_vm15 = vcmp.eq.f32.partialorder %v1774_v10, %v402_v27  ;;  %v416_v28 = vcvt.s32.f32 %v414_v23  ;;  %v415_v41 = vcvt.s32.f32 %v413_v39 }
 0x33a   : > { %v410_v29 = vsel %vm406_vm14, %v1741_v19, 128  ;;  %v411_v30 = vsel %vm407_vm15, %v1741_v19, 128 }
 0x33b   : > { %417 = vmin.xlane.f32.xlu0 %v416_v28  ;;  %v428_v31 = vshra.s32 %v410_v29, 16  ;;  %v442_v32 = vshra.s32 %v411_v30, 16  ;;  %v427_v42 = vand.u32 65535, %v410_v29  ;;  %v441_v43 = vand.u32 65535, %v411_v30 }
 0x33c   : > { %v404_v33 = vpop.xlane.xlu1 %403 }
 0x33d   : > { %vm408_vm1 = vcmp.eq.f32.partialorder %v1780_v12, %v404_v33  ;;  %v430_v34 = vcvt.s32.f32 %v428_v31  ;;  %v444_v35 = vcvt.s32.f32 %v442_v32  ;;  %v429_v47 = vcvt.s32.f32 %v427_v42 }
 0x33e   : > { %v412_v36 = vsel %vm408_vm1, %v1741_v19, 128  ;;  %v443_v48 = vcvt.s32.f32 %v441_v43 }
 0x33f   : > { %431 = vmin.xlane.f32.xlu1 %v430_v34  ;;  %445 = vmin.xlane.f32.xlu0 %v444_v35  ;;  %v456_v37 = vshra.s32 %v412_v36, 16  ;;  %v455_v49 = vand.u32 65535, %v412_v36 }
 0x341   : > { %v458_v38 = vcvt.s32.f32 %v456_v37  ;;  %v457_v53 = vcvt.s32.f32 %v455_v49 }
 0x343   : > { %459 = vmin.xlane.f32.xlu1 %v458_v38 }
 0x3c8   : > { %v418_v40 = vpop.xlane.xlu0 %417 }
 0x3c9   : > { %vm419_vm2 = vcmp.eq.f32.partialorder %v416_v28, %v418_v40  ;;  %v424_v55 = vcvt.f32.s32 %v418_v40 }
 0x3ca   : > { %v420_v44 = vsel %vm419_vm2, %v415_v41, inf }
 0x3cb   : > { %421 = vmin.xlane.f32.xlu0 %v420_v44  ;;  %v425_v59 = vshll.u32 %v424_v55, 16 }
 0x3cc   : > { %v432_v45 = vpop.xlane.xlu1 %431  ;;  %v446_v46 = vpop.xlane.xlu0 %445 }
 0x3cd   : > { %vm433_vm3 = vcmp.eq.f32.partialorder %v430_v34, %v432_v45  ;;  %vm447_vm4 = vcmp.eq.f32.partialorder %v444_v35, %v446_v46  ;;  %v438_v56 = vcvt.f32.s32 %v432_v45  ;;  %v452_v57 = vcvt.f32.s32 %v446_v46 }
 0x3ce   : > { %v434_v50 = vsel %vm433_vm3, %v429_v47, inf  ;;  %v448_v51 = vsel %vm447_vm4, %v443_v48, inf }
 0x3cf   : > { %435 = vmin.xlane.f32.xlu1 %v434_v50  ;;  %449 = vmin.xlane.f32.xlu0 %v448_v51  ;;  %v439_v62 = vshll.u32 %v438_v56, 16  ;;  %v453_v63 = vshll.u32 %v452_v57, 16 }
 0x3d0   : > { %v460_v52 = vpop.xlane.xlu1 %459 }
 0x3d1   : > { %vm461_vm5 = vcmp.eq.f32.partialorder %v458_v38, %v460_v52  ;;  %v466_v3 = vcvt.f32.s32 %v460_v52 }
 0x3d2   : > { %v462_v54 = vsel %vm461_vm5, %v457_v53, inf }
 0x3d3   : > { %463 = vmin.xlane.f32.xlu1 %v462_v54  ;;  %v467_v22 = vshll.u32 %v466_v3, 16 }
 0x458   : > { %v422_v58 = vpop.xlane.xlu0 %421 }
 0x459   : > { %v423_v60 = vcvt.f32.s32 %v422_v58 }
 0x45b   : > { %v426_v61 = vadd.s32 %v425_v59, %v423_v60 }
 0x45c   : > { %v436_v0 = vpop.xlane.xlu1 %435  ;;  %v450_v1 = vpop.xlane.xlu0 %449 }
 0x45d   : > { %v437_v4 = vcvt.f32.s32 %v436_v0  ;;  %v451_v5 = vcvt.f32.s32 %v450_v1  ;;  %vm469_vm6 = vcmp.eq.s32.totalorder %v1741_v19, %v426_v61 }
 0x45e   : > { %v1793_v6 = vsel %vm469_vm6, -1e+30, %v1765_v2 }
 0x45f   : > { %v440_v7 = vadd.s32 %v439_v62, %v437_v4  ;;  %v454_v11 = vadd.s32 %v453_v63, %v451_v5  ;;  %477 = vmax.xlane.f32.xlu0 %v1793_v6 }
 0x460   : > { %v464_v18 = vpop.xlane.xlu1 %463 }
 0x461   : > { %v465_v23 = vcvt.f32.s32 %v464_v18  ;;  %vm470_vm7 = vcmp.eq.s32.totalorder %v1741_v19, %v440_v7  ;;  %vm471_vm8 = vcmp.eq.s32.totalorder %v1741_v19, %v454_v11 }
 0x462   : > { %v1799_v24 = vsel %vm470_vm7, -1e+30, %v1771_v8  ;;  %v1802_v27 = vsel %vm471_vm8, -1e+30, %v1774_v10 }
 0x463   : > { %v468_v28 = vadd.s32 %v467_v22, %v465_v23  ;;  %479 = vmax.xlane.f32.xlu1 %v1799_v24  ;;  %481 = vmax.xlane.f32.xlu0 %v1802_v27 }
 0x465   : > { %vm472_vm9 = vcmp.eq.s32.totalorder %v1741_v19, %v468_v28 }
 0x466   : > { %v1808_v2 = vsel %vm472_vm9, -1e+30, %v1780_v12 }
 0x467   : > { %483 = vmax.xlane.f32.xlu1 %v1808_v2 }
 0x4ec   : > { %v478_v29 = vpop.xlane.xlu0 %477 }
 0x4ed   : > { %vm485_vm10 = vcmp.eq.f32.partialorder %v1793_v6, %v478_v29 }
 0x4ee   : > { %v489_v8 = vsel %vm485_vm10, %v1741_v19, 128 }
 0x4ef   : > { %v494_v30 = vshra.s32 %v489_v8, 16  ;;  %v493_v42 = vand.u32 65535, %v489_v8 }
 0x4f0   : > { %v480_v10 = vpop.xlane.xlu1 %479  ;;  %v482_v31 = vpop.xlane.xlu0 %481 }
 0x4f1   : > { %vm486_vm11 = vcmp.eq.f32.partialorder %v1799_v24, %v480_v10  ;;  %vm487_vm12 = vcmp.eq.f32.partialorder %v1802_v27, %v482_v31  ;;  %v496_v32 = vcvt.s32.f32 %v494_v30  ;;  %v495_v44 = vcvt.s32.f32 %v493_v42 }
 0x4f2   : > { %v490_v33 = vsel %vm486_vm11, %v1741_v19, 128  ;;  %v491_v12 = vsel %vm487_vm12, %v1741_v19, 128 }
 0x4f3   : > { %497 = vmin.xlane.f32.xlu0 %v496_v32  ;;  %v508_v34 = vshra.s32 %v490_v33, 16  ;;  %v522_v35 = vshra.s32 %v491_v12, 16  ;;  %v507_v45 = vand.u32 65535, %v490_v33  ;;  %v521_v46 = vand.u32 65535, %v491_v12 }
 0x4f4   : > { %v484_v36 = vpop.xlane.xlu1 %483 }
 0x4f5   : > { %vm488_vm13 = vcmp.eq.f32.partialorder %v1808_v2, %v484_v36  ;;  %v510_v37 = vcvt.s32.f32 %v508_v34  ;;  %v524_v38 = vcvt.s32.f32 %v522_v35  ;;  %v509_v50 = vcvt.s32.f32 %v507_v45 }
 0x4f6   : > { %v492_v39 = vsel %vm488_vm13, %v1741_v19, 128  ;;  %v523_v51 = vcvt.s32.f32 %v521_v46 }
 0x4f7   : > { %511 = vmin.xlane.f32.xlu1 %v510_v37  ;;  %525 = vmin.xlane.f32.xlu0 %v524_v38  ;;  %v536_v40 = vshra.s32 %v492_v39, 16  ;;  %v535_v52 = vand.u32 65535, %v492_v39 }
 0x4f9   : > { %v538_v41 = vcvt.s32.f32 %v536_v40  ;;  %v537_v56 = vcvt.s32.f32 %v535_v52 }
 0x4fb   : > { %539 = vmin.xlane.f32.xlu1 %v538_v41 }
 0x580   : > { %v498_v43 = vpop.xlane.xlu0 %497 }
 0x581   : > { %vm499_vm14 = vcmp.eq.f32.partialorder %v496_v32, %v498_v43  ;;  %v504_v58 = vcvt.f32.s32 %v498_v43 }
 0x582   : > { %v500_v47 = vsel %vm499_vm14, %v495_v44, inf }
 0x583   : > { %501 = vmin.xlane.f32.xlu0 %v500_v47  ;;  %v505_v62 = vshll.u32 %v504_v58, 16 }
 0x584   : > { %v512_v48 = vpop.xlane.xlu1 %511  ;;  %v526_v49 = vpop.xlane.xlu0 %525 }
 0x585   : > { %vm513_vm15 = vcmp.eq.f32.partialorder %v510_v37, %v512_v48  ;;  %vm527_vm1 = vcmp.eq.f32.partialorder %v524_v38, %v526_v49  ;;  %v518_v59 = vcvt.f32.s32 %v512_v48  ;;  %v532_v60 = vcvt.f32.s32 %v526_v49 }
 0x586   : > { %v514_v53 = vsel %vm513_vm15, %v509_v50, inf  ;;  %v528_v54 = vsel %vm527_vm1, %v523_v51, inf }
 0x587   : > { %515 = vmin.xlane.f32.xlu1 %v514_v53  ;;  %529 = vmin.xlane.f32.xlu0 %v528_v54  ;;  %v519_v1 = vshll.u32 %v518_v59, 16  ;;  %v533_v3 = vshll.u32 %v532_v60, 16 }
 0x588   : > { %v540_v55 = vpop.xlane.xlu1 %539 }
 0x589   : > { %vm541_vm2 = vcmp.eq.f32.partialorder %v538_v41, %v540_v55  ;;  %v546_v7 = vcvt.f32.s32 %v540_v55 }
 0x58a   : > { %v542_v57 = vsel %vm541_vm2, %v537_v56, inf }
 0x58b   : > { %543 = vmin.xlane.f32.xlu1 %v542_v57  ;;  %v547_v8 = vshll.u32 %v546_v7, 16 }
 0x610   : > { %v502_v61 = vpop.xlane.xlu0 %501 }
 0x611   : > { %v503_v63 = vcvt.f32.s32 %v502_v61 }
 0x613   : > { %v506_v0 = vadd.s32 %v505_v62, %v503_v63 }
 0x614   : > { %v516_v4 = vpop.xlane.xlu1 %515  ;;  %v530_v5 = vpop.xlane.xlu0 %529 }
 0x615   : > { %v517_v11 = vcvt.f32.s32 %v516_v4  ;;  %v531_v18 = vcvt.f32.s32 %v530_v5  ;;  %vm549_vm3 = vcmp.eq.s32.totalorder %v1741_v19, %v506_v0 }
 0x616   : > { %v1821_v22 = vsel %vm549_vm3, -1e+30, %v1793_v6 }
 0x617   : > { %v520_v23 = vadd.s32 %v519_v1, %v517_v11  ;;  %v534_v28 = vadd.s32 %v533_v3, %v531_v18  ;;  %557 = vmax.xlane.f32.xlu0 %v1821_v22 }
 0x618   : > { %v544_v29 = vpop.xlane.xlu1 %543 }
 0x619   : > { %v545_v30 = vcvt.f32.s32 %v544_v29  ;;  %vm550_vm4 = vcmp.eq.s32.totalorder %v1741_v19, %v520_v23  ;;  %vm551_vm5 = vcmp.eq.s32.totalorder %v1741_v19, %v534_v28 }
 0x61a   : > { %v1827_v10 = vsel %vm550_vm4, -1e+30, %v1799_v24  ;;  %v1830_v31 = vsel %vm551_vm5, -1e+30, %v1802_v27 }
 0x61b   : > { %v548_v32 = vadd.s32 %v547_v8, %v545_v30  ;;  %559 = vmax.xlane.f32.xlu1 %v1827_v10  ;;  %561 = vmax.xlane.f32.xlu0 %v1830_v31 }
 0x61d   : > { %vm552_vm6 = vcmp.eq.s32.totalorder %v1741_v19, %v548_v32 }
 0x61e   : > { %v1836_v6 = vsel %vm552_vm6, -1e+30, %v1808_v2 }
 0x61f   : > { %563 = vmax.xlane.f32.xlu1 %v1836_v6 }
 0x6a4   : > { %v558_v33 = vpop.xlane.xlu0 %557 }
 0x6a5   : > { %vm565_vm7 = vcmp.eq.f32.partialorder %v1821_v22, %v558_v33 }
 0x6a6   : > { %v569_v24 = vsel %vm565_vm7, %v1741_v19, 128 }
 0x6a7   : > { %v574_v12 = vshra.s32 %v569_v24, 16  ;;  %v573_v45 = vand.u32 65535, %v569_v24 }
 0x6a8   : > { %v560_v27 = vpop.xlane.xlu1 %559  ;;  %v562_v34 = vpop.xlane.xlu0 %561 }
 0x6a9   : > { %vm566_vm8 = vcmp.eq.f32.partialorder %v1827_v10, %v560_v27  ;;  %vm567_vm9 = vcmp.eq.f32.partialorder %v1830_v31, %v562_v34  ;;  %v576_v35 = vcvt.s32.f32 %v574_v12  ;;  %v575_v47 = vcvt.s32.f32 %v573_v45 }
 0x6aa   : > { %v570_v36 = vsel %vm566_vm8, %v1741_v19, 128  ;;  %v571_v2 = vsel %vm567_vm9, %v1741_v19, 128 }
 0x6ab   : > { %577 = vmin.xlane.f32.xlu0 %v576_v35  ;;  %v588_v37 = vshra.s32 %v570_v36, 16  ;;  %v602_v38 = vshra.s32 %v571_v2, 16  ;;  %v587_v48 = vand.u32 65535, %v570_v36  ;;  %v601_v49 = vand.u32 65535, %v571_v2 }
 0x6ac   : > { %v564_v39 = vpop.xlane.xlu1 %563 }
 0x6ad   : > { %vm568_vm10 = vcmp.eq.f32.partialorder %v1836_v6, %v564_v39  ;;  %v590_v40 = vcvt.s32.f32 %v588_v37  ;;  %v604_v41 = vcvt.s32.f32 %v602_v38  ;;  %v589_v53 = vcvt.s32.f32 %v587_v48 }
 0x6ae   : > { %v572_v42 = vsel %vm568_vm10, %v1741_v19, 128  ;;  %v603_v54 = vcvt.s32.f32 %v601_v49 }
 0x6af   : > { %591 = vmin.xlane.f32.xlu1 %v590_v40  ;;  %605 = vmin.xlane.f32.xlu0 %v604_v41  ;;  %v616_v43 = vshra.s32 %v572_v42, 16  ;;  %v615_v55 = vand.u32 65535, %v572_v42 }
 0x6b1   : > { %v618_v44 = vcvt.s32.f32 %v616_v43  ;;  %v617_v59 = vcvt.s32.f32 %v615_v55 }
 0x6b3   : > { %619 = vmin.xlane.f32.xlu1 %v618_v44 }
 0x738   : > { %v578_v46 = vpop.xlane.xlu0 %577 }
 0x739   : > { %vm579_vm11 = vcmp.eq.f32.partialorder %v576_v35, %v578_v46  ;;  %v584_v61 = vcvt.f32.s32 %v578_v46 }
 0x73a   : > { %v580_v50 = vsel %vm579_vm11, %v575_v47, inf }
 0x73b   : > { %581 = vmin.xlane.f32.xlu0 %v580_v50  ;;  %v585_v1 = vshll.u32 %v584_v61, 16 }
 0x73c   : > { %v592_v51 = vpop.xlane.xlu1 %591  ;;  %v606_v52 = vpop.xlane.xlu0 %605 }
 0x73d   : > { %vm593_vm12 = vcmp.eq.f32.partialorder %v590_v40, %v592_v51  ;;  %vm607_vm13 = vcmp.eq.f32.partialorder %v604_v41, %v606_v52  ;;  %v598_v62 = vcvt.f32.s32 %v592_v51  ;;  %v612_v63 = vcvt.f32.s32 %v606_v52 }
 0x73e   : > { %v594_v56 = vsel %vm593_vm12, %v589_v53, inf  ;;  %v608_v57 = vsel %vm607_vm13, %v603_v54, inf }
 0x73f   : > { %595 = vmin.xlane.f32.xlu1 %v594_v56  ;;  %609 = vmin.xlane.f32.xlu0 %v608_v57  ;;  %v599_v5 = vshll.u32 %v598_v62, 16  ;;  %v613_v7 = vshll.u32 %v612_v63, 16 }
 0x740   : > { %v620_v58 = vpop.xlane.xlu1 %619 }
 0x741   : > { %vm621_vm14 = vcmp.eq.f32.partialorder %v618_v44, %v620_v58  ;;  %v626_v23 = vcvt.f32.s32 %v620_v58 }
 0x742   : > { %v622_v60 = vsel %vm621_vm14, %v617_v59, inf }
 0x743   : > { %623 = vmin.xlane.f32.xlu1 %v622_v60  ;;  %v627_v24 = vshll.u32 %v626_v23, 16 }
 0x7c8   : > { %v582_v0 = vpop.xlane.xlu0 %581 }
 0x7c9   : > { %v583_v3 = vcvt.f32.s32 %v582_v0 }
 0x7cb   : > { %v586_v4 = vadd.s32 %v585_v1, %v583_v3 }
 0x7cc   : > { %v596_v11 = vpop.xlane.xlu1 %595  ;;  %v610_v18 = vpop.xlane.xlu0 %609 }
 0x7cd   : > { %v597_v28 = vcvt.f32.s32 %v596_v11  ;;  %v611_v29 = vcvt.f32.s32 %v610_v18  ;;  %vm629_vm15 = vcmp.eq.s32.totalorder %v1741_v19, %v586_v4 }
 0x7ce   : > { %v1849_v8 = vsel %vm629_vm15, -1e+30, %v1821_v22 }
 0x7cf   : > { %v600_v30 = vadd.s32 %v599_v5, %v597_v28  ;;  %v614_v32 = vadd.s32 %v613_v7, %v611_v29  ;;  %637 = vmax.xlane.f32.xlu0 %v1849_v8 }
 0x7d0   : > { %v624_v33 = vpop.xlane.xlu1 %623 }
 0x7d1   : > { %v625_v12 = vcvt.f32.s32 %v624_v33  ;;  %vm630_vm1 = vcmp.eq.s32.totalorder %v1741_v19, %v600_v30  ;;  %vm631_vm2 = vcmp.eq.s32.totalorder %v1741_v19, %v614_v32 }
 0x7d2   : > { %v1855_v27 = vsel %vm630_vm1, -1e+30, %v1827_v10  ;;  %v1858_v34 = vsel %vm631_vm2, -1e+30, %v1830_v31 }
 0x7d3   : > { %v628_v35 = vadd.s32 %v627_v24, %v625_v12  ;;  %639 = vmax.xlane.f32.xlu1 %v1855_v27  ;;  %641 = vmax.xlane.f32.xlu0 %v1858_v34 }
 0x7d5   : > { %vm632_vm3 = vcmp.eq.s32.totalorder %v1741_v19, %v628_v35 }
 0x7d6   : > { %v1864_v22 = vsel %vm632_vm3, -1e+30, %v1836_v6 }
 0x7d7   : > { %643 = vmax.xlane.f32.xlu1 %v1864_v22 }
 0x85c   : > { %v638_v36 = vpop.xlane.xlu0 %637 }
 0x85d   : > { %vm645_vm4 = vcmp.eq.f32.partialorder %v1849_v8, %v638_v36 }
 0x85e   : > { %v649_v10 = vsel %vm645_vm4, %v1741_v19, 128 }
 0x85f   : > { %v654_v2 = vshra.s32 %v649_v10, 16  ;;  %v653_v48 = vand.u32 65535, %v649_v10 }
 0x860   : > { %v640_v31 = vpop.xlane.xlu1 %639  ;;  %v642_v37 = vpop.xlane.xlu0 %641 }
 0x861   : > { %vm646_vm5 = vcmp.eq.f32.partialorder %v1855_v27, %v640_v31  ;;  %vm647_vm6 = vcmp.eq.f32.partialorder %v1858_v34, %v642_v37  ;;  %v656_v38 = vcvt.s32.f32 %v654_v2  ;;  %v655_v50 = vcvt.s32.f32 %v653_v48 }
 0x862   : > { %v650_v39 = vsel %vm646_vm5, %v1741_v19, 128  ;;  %v651_v6 = vsel %vm647_vm6, %v1741_v19, 128 }
 0x863   : > { %657 = vmin.xlane.f32.xlu0 %v656_v38  ;;  %v668_v40 = vshra.s32 %v650_v39, 16  ;;  %v682_v41 = vshra.s32 %v651_v6, 16  ;;  %v667_v51 = vand.u32 65535, %v650_v39  ;;  %v681_v52 = vand.u32 65535, %v651_v6 }
 0x864   : > { %v644_v42 = vpop.xlane.xlu1 %643 }
 0x865   : > { %vm648_vm7 = vcmp.eq.f32.partialorder %v1864_v22, %v644_v42  ;;  %v670_v43 = vcvt.s32.f32 %v668_v40  ;;  %v684_v44 = vcvt.s32.f32 %v682_v41  ;;  %v669_v56 = vcvt.s32.f32 %v667_v51 }
 0x866   : > { %v652_v45 = vsel %vm648_vm7, %v1741_v19, 128  ;;  %v683_v57 = vcvt.s32.f32 %v681_v52 }
 0x867   : > { %671 = vmin.xlane.f32.xlu1 %v670_v43  ;;  %685 = vmin.xlane.f32.xlu0 %v684_v44  ;;  %v696_v46 = vshra.s32 %v652_v45, 16  ;;  %v695_v58 = vand.u32 65535, %v652_v45 }
 0x869   : > { %v698_v47 = vcvt.s32.f32 %v696_v46  ;;  %v697_v62 = vcvt.s32.f32 %v695_v58 }
 0x86b   : > { %699 = vmin.xlane.f32.xlu1 %v698_v47 }
 0x8f0   : > { %v658_v49 = vpop.xlane.xlu0 %657 }
 0x8f1   : > { %vm659_vm8 = vcmp.eq.f32.partialorder %v656_v38, %v658_v49  ;;  %v664_v0 = vcvt.f32.s32 %v658_v49 }
 0x8f2   : > { %v660_v53 = vsel %vm659_vm8, %v655_v50, inf }
 0x8f3   : > { %661 = vmin.xlane.f32.xlu0 %v660_v53  ;;  %v665_v5 = vshll.u32 %v664_v0, 16 }
 0x8f4   : > { %v672_v54 = vpop.xlane.xlu1 %671  ;;  %v686_v55 = vpop.xlane.xlu0 %685 }
 0x8f5   : > { %vm673_vm9 = vcmp.eq.f32.partialorder %v670_v43, %v672_v54  ;;  %vm687_vm10 = vcmp.eq.f32.partialorder %v684_v44, %v686_v55  ;;  %v678_v1 = vcvt.f32.s32 %v672_v54  ;;  %v692_v3 = vcvt.f32.s32 %v686_v55 }
 0x8f6   : > { %v674_v59 = vsel %vm673_vm9, %v669_v56, inf  ;;  %v688_v60 = vsel %vm687_vm10, %v683_v57, inf }
 0x8f7   : > { %675 = vmin.xlane.f32.xlu1 %v674_v59  ;;  %689 = vmin.xlane.f32.xlu0 %v688_v60  ;;  %v679_v18 = vshll.u32 %v678_v1, 16  ;;  %v693_v23 = vshll.u32 %v692_v3, 16 }
 0x8f8   : > { %v700_v61 = vpop.xlane.xlu1 %699 }
 0x8f9   : > { %vm701_vm11 = vcmp.eq.f32.partialorder %v698_v47, %v700_v61  ;;  %v706_v30 = vcvt.f32.s32 %v700_v61 }
 0x8fa   : > { %v702_v63 = vsel %vm701_vm11, %v697_v62, inf }
 0x8fb   : > { %703 = vmin.xlane.f32.xlu1 %v702_v63  ;;  %v707_v10 = vshll.u32 %v706_v30, 16 }
 0x980   : > { %v662_v4 = vpop.xlane.xlu0 %661 }
 0x981   : > { %v663_v7 = vcvt.f32.s32 %v662_v4 }
 0x983   : > { %v666_v11 = vadd.s32 %v665_v5, %v663_v7 }
 0x984   : > { %v676_v28 = vpop.xlane.xlu1 %675  ;;  %v690_v29 = vpop.xlane.xlu0 %689 }
 0x985   : > { %v677_v32 = vcvt.f32.s32 %v676_v28  ;;  %v691_v33 = vcvt.f32.s32 %v690_v29  ;;  %vm709_vm12 = vcmp.eq.s32.totalorder %v1741_v19, %v666_v11 }
 0x986   : > { %v1877_v24 = vsel %vm709_vm12, -1e+30, %v1849_v8 }
 0x987   : > { %v680_v12 = vadd.s32 %v679_v18, %v677_v32  ;;  %v694_v35 = vadd.s32 %v693_v23, %v691_v33  ;;  %717 = vmax.xlane.f32.xlu0 %v1877_v24 }
 0x988   : > { %v704_v36 = vpop.xlane.xlu1 %703 }
 0x989   : > { %v705_v2 = vcvt.f32.s32 %v704_v36  ;;  %vm710_vm13 = vcmp.eq.s32.totalorder %v1741_v19, %v680_v12  ;;  %vm711_vm14 = vcmp.eq.s32.totalorder %v1741_v19, %v694_v35 }
 0x98a   : > { %v1883_v31 = vsel %vm710_vm13, -1e+30, %v1855_v27  ;;  %v1886_v37 = vsel %vm711_vm14, -1e+30, %v1858_v34 }
 0x98b   : > { %v708_v38 = vadd.s32 %v707_v10, %v705_v2  ;;  %719 = vmax.xlane.f32.xlu1 %v1883_v31  ;;  %721 = vmax.xlane.f32.xlu0 %v1886_v37 }
 0x98d   : > { %vm712_vm15 = vcmp.eq.s32.totalorder %v1741_v19, %v708_v38 }
 0x98e   : > { %v1892_v8 = vsel %vm712_vm15, -1e+30, %v1864_v22 }
 0x98f   : > { %723 = vmax.xlane.f32.xlu1 %v1892_v8 }
 0xa14   : > { %v718_v39 = vpop.xlane.xlu0 %717 }
 0xa15   : > { %vm725_vm1 = vcmp.eq.f32.partialorder %v1877_v24, %v718_v39 }
 0xa16   : > { %v729_v27 = vsel %vm725_vm1, %v1741_v19, 128 }
 0xa17   : > { %v734_v6 = vshra.s32 %v729_v27, 16  ;;  %v733_v51 = vand.u32 65535, %v729_v27 }
 0xa18   : > { %v720_v34 = vpop.xlane.xlu1 %719  ;;  %v722_v40 = vpop.xlane.xlu0 %721 }
 0xa19   : > { %vm726_vm2 = vcmp.eq.f32.partialorder %v1883_v31, %v720_v34  ;;  %vm727_vm3 = vcmp.eq.f32.partialorder %v1886_v37, %v722_v40  ;;  %v736_v41 = vcvt.s32.f32 %v734_v6  ;;  %v735_v55 = vcvt.s32.f32 %v733_v51 }
 0xa1a   : > { %v730_v42 = vsel %vm726_vm2, %v1741_v19, 128  ;;  %v731_v22 = vsel %vm727_vm3, %v1741_v19, 128 }
 0xa1b   : > { %737 = vmin.xlane.f32.xlu0 %v736_v41  ;;  %v748_v43 = vshra.s32 %v730_v42, 16  ;;  %v762_v44 = vshra.s32 %v731_v22, 16  ;;  %v747_v52 = vand.u32 65535, %v730_v42  ;;  %v761_v53 = vand.u32 65535, %v731_v22 }
 0xa1c   : > { %v724_v45 = vpop.xlane.xlu1 %723 }
 0xa1d   : > { %vm728_vm4 = vcmp.eq.f32.partialorder %v1892_v8, %v724_v45  ;;  %v750_v46 = vcvt.s32.f32 %v748_v43  ;;  %v764_v47 = vcvt.s32.f32 %v762_v44  ;;  %v749_v60 = vcvt.s32.f32 %v747_v52 }
 0xa1e   : > { %v732_v48 = vsel %vm728_vm4, %v1741_v19, 128  ;;  %v763_v61 = vcvt.s32.f32 %v761_v53 }
 0xa1f   : > { %751 = vmin.xlane.f32.xlu1 %v750_v46  ;;  %765 = vmin.xlane.f32.xlu0 %v764_v47  ;;  %v776_v49 = vshra.s32 %v732_v48, 16  ;;  %v775_v57 = vand.u32 65535, %v732_v48 }
 0xa21   : > { %v778_v50 = vcvt.s32.f32 %v776_v49  ;;  %v777_v1 = vcvt.s32.f32 %v775_v57 }
 0xa23   : > { %779 = vmin.xlane.f32.xlu1 %v778_v50 }
 0xaa8   : > { %v738_v54 = vpop.xlane.xlu0 %737 }
 0xaa9   : > { %vm739_vm5 = vcmp.eq.f32.partialorder %v736_v41, %v738_v54  ;;  %v744_v4 = vcvt.f32.s32 %v738_v54 }
 0xaaa   : > { %v740_v56 = vsel %vm739_vm5, %v735_v55, inf }
 0xaab   : > { %741 = vmin.xlane.f32.xlu0 %v740_v56  ;;  %v745_v18 = vshll.u32 %v744_v4, 16 }
 0xaac   : > { %v752_v58 = vpop.xlane.xlu1 %751  ;;  %v766_v59 = vpop.xlane.xlu0 %765 }
 0xaad   : > { %vm753_vm6 = vcmp.eq.f32.partialorder %v750_v46, %v752_v58  ;;  %vm767_vm7 = vcmp.eq.f32.partialorder %v764_v47, %v766_v59  ;;  %v758_v5 = vcvt.f32.s32 %v752_v58  ;;  %v772_v7 = vcvt.f32.s32 %v766_v59 }
 0xaae   : > { %v754_v62 = vsel %vm753_vm6, %v749_v60, inf  ;;  %v768_v63 = vsel %vm767_vm7, %v763_v61, inf }
 0xaaf   : > { %755 = vmin.xlane.f32.xlu1 %v754_v62  ;;  %769 = vmin.xlane.f32.xlu0 %v768_v63  ;;  %v759_v29 = vshll.u32 %v758_v5, 16  ;;  %v773_v30 = vshll.u32 %v772_v7, 16 }
 0xab0   : > { %v780_v0 = vpop.xlane.xlu1 %779 }
 0xab1   : > { %vm781_vm8 = vcmp.eq.f32.partialorder %v778_v50, %v780_v0  ;;  %v786_v12 = vcvt.f32.s32 %v780_v0 }
 0xab2   : > { %v782_v3 = vsel %vm781_vm8, %v777_v1, inf }
 0xab3   : > { %783 = vmin.xlane.f32.xlu1 %v782_v3  ;;  %v787_v6 = vshll.u32 %v786_v12, 16 }
 0xb38   : > { %v742_v11 = vpop.xlane.xlu0 %741 }
 0xb39   : > { %v743_v23 = vcvt.f32.s32 %v742_v11 }
 0xb3b   : > { %v746_v28 = vadd.s32 %v745_v18, %v743_v23 }
 0xb3c   : > { %v756_v32 = vpop.xlane.xlu1 %755  ;;  %v770_v33 = vpop.xlane.xlu0 %769 }
 0xb3d   : > { %v757_v35 = vcvt.f32.s32 %v756_v32  ;;  %v771_v36 = vcvt.f32.s32 %v770_v33  ;;  %vm789_vm9 = vcmp.eq.s32.totalorder %v1741_v19, %v746_v28 }
 0xb3e   : > { %v793_v10 = vsel %vm789_vm9, -1e+30, %v1877_v24 }
 0xb3f   : > { %v760_v2 = vadd.s32 %v759_v29, %v757_v35  ;;  %v774_v38 = vadd.s32 %v773_v30, %v771_v36  ;;  %vm797_vm10 = vcmp.lt.f32.partialorder %v793_v10, -5e+29 }
 0xb40   : > { %v784_v39 = vpop.xlane.xlu1 %783  ;;  %v1905_v27 = vsel %vm797_vm10, 1e+30, %v793_v10 }
 0xb41   : > { %v785_v34 = vcvt.f32.s32 %v784_v39  ;;  %805 = vmin.xlane.f32.xlu0 %v1905_v27  ;;  %vm790_vm11 = vcmp.eq.s32.totalorder %v1741_v19, %v760_v2  ;;  %vm791_vm12 = vcmp.eq.s32.totalorder %v1741_v19, %v774_v38 }
 0xb42   : > { %v794_v40 = vsel %vm790_vm11, -1e+30, %v1883_v31  ;;  %v795_v41 = vsel %vm791_vm12, -1e+30, %v1886_v37 }
 0xb43   : > { %v788_v42 = vadd.s32 %v787_v6, %v785_v34  ;;  %vm798_vm13 = vcmp.lt.f32.partialorder %v794_v40, -5e+29  ;;  %vm799_vm14 = vcmp.lt.f32.partialorder %v795_v41, -5e+29 }
 0xb44   : > { %v1912_v24 = vsel %vm798_vm13, 1e+30, %v794_v40  ;;  %v1914_v22 = vsel %vm799_vm14, 1e+30, %v795_v41 }
 0xb45   : > { %807 = vmin.xlane.f32.xlu1 %v1912_v24  ;;  %809 = vmin.xlane.f32.xlu0 %v1914_v22  ;;  %vm792_vm15 = vcmp.eq.s32.totalorder %v1741_v19, %v788_v42 }
 0xb46   : > { %v796_v43 = vsel %vm792_vm15, -1e+30, %v1892_v8 }
 0xb47   : > { %vm800_vm1 = vcmp.lt.f32.partialorder %v796_v43, -5e+29 }
 0xb48   : > { %v1920_v44 = vsel %vm800_vm1, 1e+30, %v796_v43 }
 0xb49   : > { %811 = vmin.xlane.f32.xlu1 %v1920_v44 }
 0xbce   : > { %v806_v31 = vpop.xlane.xlu0 %805 }
 0xbcf   : > { %vm813_vm2 = vcmp.eq.f32.partialorder %v1905_v27, %v806_v31 }
 0xbd0   : > { %v817_v37 = vsel %vm813_vm2, %v1741_v19, 128 }
 0xbd1   : > { %v822_v45 = vshra.s32 %v817_v37, 16  ;;  %v821_v58 = vand.u32 65535, %v817_v37 }
 0xbd2   : > { %v808_v46 = vpop.xlane.xlu1 %807  ;;  %v810_v47 = vpop.xlane.xlu0 %809 }
 0xbd3   : > { %vm814_vm3 = vcmp.eq.f32.partialorder %v1912_v24, %v808_v46  ;;  %vm815_vm4 = vcmp.eq.f32.partialorder %v1914_v22, %v810_v47  ;;  %v824_v48 = vcvt.s32.f32 %v822_v45  ;;  %v823_v62 = vcvt.s32.f32 %v821_v58 }
 0xbd4   : > { %v818_v8 = vsel %vm814_vm3, %v1741_v19, 128  ;;  %v819_v49 = vsel %vm815_vm4, %v1741_v19, 128 }
 0xbd5   : > { %825 = vmin.xlane.f32.xlu0 %v824_v48  ;;  %v836_v50 = vshra.s32 %v818_v8, 16  ;;  %v850_v51 = vshra.s32 %v819_v49, 16  ;;  %v835_v59 = vand.u32 65535, %v818_v8  ;;  %v849_v60 = vand.u32 65535, %v819_v49 }
 0xbd6   : > { %v812_v52 = vpop.xlane.xlu1 %811 }
 0xbd7   : > { %vm816_vm5 = vcmp.eq.f32.partialorder %v1920_v44, %v812_v52  ;;  %v838_v53 = vcvt.s32.f32 %v836_v50  ;;  %v852_v54 = vcvt.s32.f32 %v850_v51  ;;  %v837_v4 = vcvt.s32.f32 %v835_v59 }
 0xbd8   : > { %v820_v55 = vsel %vm816_vm5, %v1741_v19, 128  ;;  %v851_v5 = vcvt.s32.f32 %v849_v60 }
 0xbd9   : > { %839 = vmin.xlane.f32.xlu1 %v838_v53  ;;  %853 = vmin.xlane.f32.xlu0 %v852_v54  ;;  %v864_v56 = vshra.s32 %v820_v55, 16  ;;  %v863_v0 = vand.u32 65535, %v820_v55 }
 0xbdb   : > { %v866_v57 = vcvt.s32.f32 %v864_v56  ;;  %v865_v23 = vcvt.s32.f32 %v863_v0 }
 0xbdd   : > { %867 = vmin.xlane.f32.xlu1 %v866_v57 }
 0xc62   : > { %v826_v61 = vpop.xlane.xlu0 %825 }
 0xc63   : > { %vm827_vm6 = vcmp.eq.f32.partialorder %v824_v48, %v826_v61  ;;  %v832_v29 = vcvt.f32.s32 %v826_v61 }
 0xc64   : > { %v828_v63 = vsel %vm827_vm6, %v823_v62, inf }
 0xc65   : > { %829 = vmin.xlane.f32.xlu0 %v828_v63  ;;  %v833_v12 = vshll.u32 %v832_v29, 16 }
 0xc66   : > { %v840_v1 = vpop.xlane.xlu1 %839  ;;  %v854_v3 = vpop.xlane.xlu0 %853 }
 0xc67   : > { %vm841_vm7 = vcmp.eq.f32.partialorder %v838_v53, %v840_v1  ;;  %vm855_vm8 = vcmp.eq.f32.partialorder %v852_v54, %v854_v3  ;;  %v846_v30 = vcvt.f32.s32 %v840_v1  ;;  %v860_v32 = vcvt.f32.s32 %v854_v3 }
 0xc68   : > { %v842_v7 = vsel %vm841_vm7, %v837_v4, inf  ;;  %v856_v11 = vsel %vm855_vm8, %v851_v5, inf }
 0xc69   : > { %843 = vmin.xlane.f32.xlu1 %v842_v7  ;;  %857 = vmin.xlane.f32.xlu0 %v856_v11  ;;  %v847_v10 = vshll.u32 %v846_v30, 16  ;;  %v861_v2 = vshll.u32 %v860_v32, 16 }
 0xc6a   : > { %v868_v18 = vpop.xlane.xlu1 %867 }
 0xc6b   : > { %vm869_vm9 = vcmp.eq.f32.partialorder %v866_v57, %v868_v18  ;;  %v874_v6 = vcvt.f32.s32 %v868_v18 }
 0xc6c   : > { %v870_v28 = vsel %vm869_vm9, %v865_v23, inf }
 0xc6d   : > { %871 = vmin.xlane.f32.xlu1 %v870_v28  ;;  %v875_v37 = vshll.u32 %v874_v6, 16 }
 0xcf2   : > { %v830_v33 = vpop.xlane.xlu0 %829 }
 0xcf3   : > { %v831_v35 = vcvt.f32.s32 %v830_v33 }
 0xcf5   : > { %v834_v36 = vadd.s32 %v833_v12, %v831_v35 }
 0xcf6   : > { %v844_v38 = vpop.xlane.xlu1 %843  ;;  %v858_v39 = vpop.xlane.xlu0 %857 }
 0xcf7   : > { %v845_v34 = vcvt.f32.s32 %v844_v38  ;;  %v859_v40 = vcvt.f32.s32 %v858_v39  ;;  %vm877_vm10 = vcmp.eq.s32.totalorder %v1741_v19, %v834_v36 }
 0xcf8   : > { %v1933_v41 = vsel %vm877_vm10, 1e+30, %v1905_v27 }
 0xcf9   : > { %v848_v42 = vadd.s32 %v847_v10, %v845_v34  ;;  %v862_v43 = vadd.s32 %v861_v2, %v859_v40  ;;  %885 = vmin.xlane.f32.xlu0 %v1933_v41 }
 0xcfa   : > { %v872_v31 = vpop.xlane.xlu1 %871 }
 0xcfb   : > { %v873_v45 = vcvt.f32.s32 %v872_v31  ;;  %vm878_vm11 = vcmp.eq.s32.totalorder %v1741_v19, %v848_v42  ;;  %vm879_vm12 = vcmp.eq.s32.totalorder %v1741_v19, %v862_v43 }
 0xcfc   : > { %v1939_v46 = vsel %vm878_vm11, 1e+30, %v1912_v24  ;;  %v1942_v47 = vsel %vm879_vm12, 1e+30, %v1914_v22 }
 0xcfd   : > { %v876_v48 = vadd.s32 %v875_v37, %v873_v45  ;;  %887 = vmin.xlane.f32.xlu1 %v1939_v46  ;;  %889 = vmin.xlane.f32.xlu0 %v1942_v47 }
 0xcff   : > { %vm880_vm13 = vcmp.eq.s32.totalorder %v1741_v19, %v876_v48 }
 0xd00   : > { %v1948_v27 = vsel %vm880_vm13, 1e+30, %v1920_v44 }
 0xd01   : > { %891 = vmin.xlane.f32.xlu1 %v1948_v27 }
 0xd86   : > { %v886_v8 = vpop.xlane.xlu0 %885 }
 0xd87   : > { %vm893_vm14 = vcmp.eq.f32.partialorder %v1933_v41, %v886_v8 }
 0xd88   : > { %v897_v24 = vsel %vm893_vm14, %v1741_v19, 128 }
 0xd89   : > { %v902_v49 = vshra.s32 %v897_v24, 16  ;;  %v901_v61 = vand.u32 65535, %v897_v24 }
 0xd8a   : > { %v888_v22 = vpop.xlane.xlu1 %887  ;;  %v890_v50 = vpop.xlane.xlu0 %889 }
 0xd8b   : > { %vm894_vm15 = vcmp.eq.f32.partialorder %v1939_v46, %v888_v22  ;;  %vm895_vm1 = vcmp.eq.f32.partialorder %v1942_v47, %v890_v50  ;;  %v904_v51 = vcvt.s32.f32 %v902_v49  ;;  %v903_v1 = vcvt.s32.f32 %v901_v61 }
 0xd8c   : > { %v898_v52 = vsel %vm894_vm15, %v1741_v19, 128  ;;  %v899_v44 = vsel %vm895_vm1, %v1741_v19, 128 }
 0xd8d   : > { %905 = vmin.xlane.f32.xlu0 %v904_v51  ;;  %v916_v53 = vshra.s32 %v898_v52, 16  ;;  %v930_v54 = vshra.s32 %v899_v44, 16  ;;  %v915_v62 = vand.u32 65535, %v898_v52  ;;  %v929_v63 = vand.u32 65535, %v899_v44 }
 0xd8e   : > { %v892_v55 = vpop.xlane.xlu1 %891 }
 0xd8f   : > { %vm896_vm2 = vcmp.eq.f32.partialorder %v1948_v27, %v892_v55  ;;  %v918_v56 = vcvt.s32.f32 %v916_v53  ;;  %v932_v57 = vcvt.s32.f32 %v930_v54  ;;  %v917_v11 = vcvt.s32.f32 %v915_v62 }
 0xd90   : > { %v900_v58 = vsel %vm896_vm2, %v1741_v19, 128  ;;  %v931_v18 = vcvt.s32.f32 %v929_v63 }
 0xd91   : > { %919 = vmin.xlane.f32.xlu1 %v918_v56  ;;  %933 = vmin.xlane.f32.xlu0 %v932_v57  ;;  %v944_v59 = vshra.s32 %v900_v58, 16  ;;  %v943_v4 = vand.u32 65535, %v900_v58 }
 0xd93   : > { %v946_v60 = vcvt.s32.f32 %v944_v59  ;;  %v945_v30 = vcvt.s32.f32 %v943_v4 }
 0xd95   : > { %947 = vmin.xlane.f32.xlu1 %v946_v60 }
 0xe1a   : > { %v906_v0 = vpop.xlane.xlu0 %905 }
 0xe1b   : > { %vm907_vm3 = vcmp.eq.f32.partialorder %v904_v51, %v906_v0  ;;  %v912_v33 = vcvt.f32.s32 %v906_v0 }
 0xe1c   : > { %v908_v3 = vsel %vm907_vm3, %v903_v1, inf }
 0xe1d   : > { %909 = vmin.xlane.f32.xlu0 %v908_v3  ;;  %v913_v10 = vshll.u32 %v912_v33, 16 }
 0xe1e   : > { %v920_v5 = vpop.xlane.xlu1 %919  ;;  %v934_v7 = vpop.xlane.xlu0 %933 }
 0xe1f   : > { %vm921_vm4 = vcmp.eq.f32.partialorder %v918_v56, %v920_v5  ;;  %vm935_vm5 = vcmp.eq.f32.partialorder %v932_v57, %v934_v7  ;;  %v926_v12 = vcvt.f32.s32 %v920_v5  ;;  %v940_v35 = vcvt.f32.s32 %v934_v7 }
 0xe20   : > { %v922_v23 = vsel %vm921_vm4, %v917_v11, inf  ;;  %v936_v28 = vsel %vm935_vm5, %v931_v18, inf }
 0xe21   : > { %923 = vmin.xlane.f32.xlu1 %v922_v23  ;;  %937 = vmin.xlane.f32.xlu0 %v936_v28  ;;  %v927_v39 = vshll.u32 %v926_v12, 16  ;;  %v941_v6 = vshll.u32 %v940_v35, 16 }
 0xe22   : > { %v948_v29 = vpop.xlane.xlu1 %947 }
 0xe23   : > { %vm949_vm6 = vcmp.eq.f32.partialorder %v946_v60, %v948_v29  ;;  %v954_v42 = vcvt.f32.s32 %v948_v29 }
 0xe24   : > { %v950_v32 = vsel %vm949_vm6, %v945_v30, inf }
 0xe25   : > { %951 = vmin.xlane.f32.xlu1 %v950_v32  ;;  %v955_v24 = vshll.u32 %v954_v42, 16 }
 0xeaa   : > { %v910_v36 = vpop.xlane.xlu0 %909 }
 0xeab   : > { %v911_v2 = vcvt.f32.s32 %v910_v36 }
 0xead   : > { %v914_v38 = vadd.s32 %v913_v10, %v911_v2 }
 0xeae   : > { %v924_v34 = vpop.xlane.xlu1 %923  ;;  %v938_v40 = vpop.xlane.xlu0 %937 }
 0xeaf   : > { %v925_v43 = vcvt.f32.s32 %v924_v34  ;;  %v939_v31 = vcvt.f32.s32 %v938_v40  ;;  %vm957_vm7 = vcmp.eq.s32.totalorder %v1741_v19, %v914_v38 }
 0xeb0   : > { %v1961_v37 = vsel %vm957_vm7, 1e+30, %v1933_v41 }
 0xeb1   : > { %v928_v45 = vadd.s32 %v927_v39, %v925_v43  ;;  %v942_v48 = vadd.s32 %v941_v6, %v939_v31  ;;  %965 = vmin.xlane.f32.xlu0 %v1961_v37 }
 0xeb2   : > { %v952_v8 = vpop.xlane.xlu1 %951 }
 0xeb3   : > { %v953_v49 = vcvt.f32.s32 %v952_v8  ;;  %vm958_vm8 = vcmp.eq.s32.totalorder %v1741_v19, %v928_v45  ;;  %vm959_vm9 = vcmp.eq.s32.totalorder %v1741_v19, %v942_v48 }
 0xeb4   : > { %v1967_v22 = vsel %vm958_vm8, 1e+30, %v1939_v46  ;;  %v1970_v50 = vsel %vm959_vm9, 1e+30, %v1942_v47 }
 0xeb5   : > { %v956_v51 = vadd.s32 %v955_v24, %v953_v49  ;;  %967 = vmin.xlane.f32.xlu1 %v1967_v22  ;;  %969 = vmin.xlane.f32.xlu0 %v1970_v50 }
 0xeb7   : > { %vm960_vm10 = vcmp.eq.s32.totalorder %v1741_v19, %v956_v51 }
 0xeb8   : > { %v1976_v41 = vsel %vm960_vm10, 1e+30, %v1948_v27 }
 0xeb9   : > { %971 = vmin.xlane.f32.xlu1 %v1976_v41 }
 0xf3e   : > { %v966_v52 = vpop.xlane.xlu0 %965 }
 0xf3f   : > { %vm973_vm11 = vcmp.eq.f32.partialorder %v1961_v37, %v966_v52 }
 0xf40   : > { %v977_v46 = vsel %vm973_vm11, %v1741_v19, 128 }
 0xf41   : > { %v982_v44 = vshra.s32 %v977_v46, 16  ;;  %v981_v0 = vand.u32 65535, %v977_v46 }
 0xf42   : > { %v968_v47 = vpop.xlane.xlu1 %967  ;;  %v970_v53 = vpop.xlane.xlu0 %969 }
 0xf43   : > { %v984_v54 = vcvt.s32.f32 %v982_v44  ;;  %vm974_vm12 = vcmp.eq.f32.partialorder %v1967_v22, %v968_v47  ;;  %vm975_vm13 = vcmp.eq.f32.partialorder %v1970_v50, %v970_v53  ;;  %v983_v1 = vcvt.s32.f32 %v981_v0 }
 0xf44   : > { %v978_v55 = vsel %vm974_vm12, %v1741_v19, 128  ;;  %v979_v27 = vsel %vm975_vm13, %v1741_v19, 128 }
 0xf45   : > { %v996_v56 = vshra.s32 %v978_v55, 16  ;;  %v1010_v57 = vshra.s32 %v979_v27, 16  ;;  %985 = vmin.xlane.f32.xlu0 %v984_v54  ;;  %v995_v3 = vand.u32 65535, %v978_v55  ;;  %v1009_v4 = vand.u32 65535, %v979_v27 }
 0xf46   : > { %v972_v58 = vpop.xlane.xlu1 %971 }
 0xf47   : > { %v998_v59 = vcvt.s32.f32 %v996_v56  ;;  %v1012_v60 = vcvt.s32.f32 %v1010_v57  ;;  %vm976_vm14 = vcmp.eq.f32.partialorder %v1976_v41, %v972_v58  ;;  %v997_v11 = vcvt.s32.f32 %v995_v3 }
 0xf48   : > { %v980_v61 = vsel %vm976_vm14, %v1741_v19, 128  ;;  %v1011_v18 = vcvt.s32.f32 %v1009_v4 }
 0xf49   : > { %999 = vmin.xlane.f32.xlu1 %v998_v59  ;;  %1013 = vmin.xlane.f32.xlu0 %v1012_v60  ;;  %v1024_v62 = vshra.s32 %v980_v61, 16  ;;  %v1023_v29 = vand.u32 65535, %v980_v61 }
 0xf4b   : > { %v1026_v63 = vcvt.s32.f32 %v1024_v62  ;;  %v1025_v33 = vcvt.s32.f32 %v1023_v29 }
 0xf4d   : > { %1027 = vmin.xlane.f32.xlu1 %v1026_v63 }
 0xfd2   : > { %v986_v5 = vpop.xlane.xlu0 %985 }
 0xfd3   : > { %vm987_vm15 = vcmp.eq.f32.partialorder %v984_v54, %v986_v5  ;;  %v992_v36 = vcvt.f32.s32 %v986_v5 }
 0xfd4   : > { %v988_v7 = vsel %vm987_vm15, %v983_v1, inf }
 0xfd5   : > { %989 = vmin.xlane.f32.xlu0 %v988_v7  ;;  %v993_v38 = vshll.u32 %v992_v36, 16 }
 0xfd6   : > { %v1000_v23 = vpop.xlane.xlu1 %999  ;;  %v1014_v28 = vpop.xlane.xlu0 %1013 }
 0xfd7   : > { %vm1001_vm1 = vcmp.eq.f32.partialorder %v998_v59, %v1000_v23  ;;  %vm1015_vm2 = vcmp.eq.f32.partialorder %v1012_v60, %v1014_v28  ;;  %v1006_v10 = vcvt.f32.s32 %v1000_v23  ;;  %v1020_v39 = vcvt.f32.s32 %v1014_v28 }
 0xfd8   : > { %v1002_v30 = vsel %vm1001_vm1, %v997_v11, inf  ;;  %v1016_v32 = vsel %vm1015_vm2, %v1011_v18, inf }
 0xfd9   : > { %1003 = vmin.xlane.f32.xlu1 %v1002_v30  ;;  %1017 = vmin.xlane.f32.xlu0 %v1016_v32  ;;  %v1007_v40 = vshll.u32 %v1006_v10, 16  ;;  %v1021_v31 = vshll.u32 %v1020_v39, 16 }
 0xfda   : > { %v1028_v12 = vpop.xlane.xlu1 %1027 }
 0xfdb   : > { %vm1029_vm3 = vcmp.eq.f32.partialorder %v1026_v63, %v1028_v12  ;;  %v1034_v8 = vcvt.f32.s32 %v1028_v12 }
 0xfdc   : > { %v1030_v35 = vsel %vm1029_vm3, %v1025_v33, inf }
 0xfdd   : > { %1031 = vmin.xlane.f32.xlu1 %v1030_v35  ;;  %v1035_v46 = vshll.u32 %v1034_v8, 16 }
0x1062   : > { %v990_v2 = vpop.xlane.xlu0 %989 }
0x1063   : > { %v991_v6 = vcvt.f32.s32 %v990_v2 }
0x1065   : > { %v994_v34 = vadd.s32 %v993_v38, %v991_v6 }
0x1066   : > { %v1004_v42 = vpop.xlane.xlu1 %1003  ;;  %v1018_v43 = vpop.xlane.xlu0 %1017 }
0x1067   : > { %v1005_v45 = vcvt.f32.s32 %v1004_v42  ;;  %v1019_v48 = vcvt.f32.s32 %v1018_v43  ;;  %vm1037_vm4 = vcmp.eq.s32.totalorder %v1741_v19, %v994_v34 }
0x1068   : > { %v1989_v24 = vsel %vm1037_vm4, 1e+30, %v1961_v37 }
0x1069   : > { %v1008_v49 = vadd.s32 %v1007_v40, %v1005_v45  ;;  %v1022_v51 = vadd.s32 %v1021_v31, %v1019_v48  ;;  %1045 = vmin.xlane.f32.xlu0 %v1989_v24 }
0x106a   : > { %v1032_v52 = vpop.xlane.xlu1 %1031 }
0x106b   : > { %vm1038_vm5 = vcmp.eq.s32.totalorder %v1741_v19, %v1008_v49  ;;  %vm1039_vm6 = vcmp.eq.s32.totalorder %v1741_v19, %v1022_v51  ;;  %v1033_v44 = vcvt.f32.s32 %v1032_v52 }
0x106c   : > { %v1995_v47 = vsel %vm1038_vm5, 1e+30, %v1967_v22  ;;  %v1998_v53 = vsel %vm1039_vm6, 1e+30, %v1970_v50 }
0x106d   : > { %1047 = vmin.xlane.f32.xlu1 %v1995_v47  ;;  %1049 = vmin.xlane.f32.xlu0 %v1998_v53  ;;  %v1036_v37 = vadd.s32 %v1035_v46, %v1033_v44 }
0x106f   : > { %vm1040_vm7 = vcmp.eq.s32.totalorder %v1741_v19, %v1036_v37 }
0x1070   : > { %v2004_v54 = vsel %vm1040_vm7, 1e+30, %v1976_v41 }
0x1071   : > { %1051 = vmin.xlane.f32.xlu1 %v2004_v54 }
0x10f6   : > { %v1046_v55 = vpop.xlane.xlu0 %1045 }
0x10f7   : > { %vm1053_vm8 = vcmp.eq.f32.partialorder %v1989_v24, %v1046_v55 }
0x10f8   : > { %v1057_v22 = vsel %vm1053_vm8, %v1741_v19, 128 }
0x10f9   : > { %v1062_v27 = vshra.s32 %v1057_v22, 16  ;;  %v1061_v4 = vand.u32 65535, %v1057_v22 }
0x10fa   : > { %v1048_v50 = vpop.xlane.xlu1 %1047  ;;  %v1050_v56 = vpop.xlane.xlu0 %1049 }
0x10fb   : > { %v1064_v57 = vcvt.s32.f32 %v1062_v27  ;;  %vm1054_vm9 = vcmp.eq.f32.partialorder %v1995_v47, %v1048_v50  ;;  %vm1055_vm10 = vcmp.eq.f32.partialorder %v1998_v53, %v1050_v56  ;;  %v1063_v5 = vcvt.s32.f32 %v1061_v4 }
0x10fc   : > { %v1058_v58 = vsel %vm1054_vm9, %v1741_v19, 128  ;;  %v1059_v41 = vsel %vm1055_vm10, %v1741_v19, 128 }
0x10fd   : > { %v1076_v59 = vshra.s32 %v1058_v58, 16  ;;  %v1090_v60 = vshra.s32 %v1059_v41, 16  ;;  %1065 = vmin.xlane.f32.xlu0 %v1064_v57  ;;  %v1075_v7 = vand.u32 65535, %v1058_v58  ;;  %v1089_v11 = vand.u32 65535, %v1059_v41 }
0x10fe   : > { %v1052_v63 = vpop.xlane.xlu1 %1051 }
0x10ff   : > { %v1078_v61 = vcvt.s32.f32 %v1076_v59  ;;  %v1092_v62 = vcvt.s32.f32 %v1090_v60  ;;  %vm1056_vm11 = vcmp.eq.f32.partialorder %v2004_v54, %v1052_v63  ;;  %v1077_v28 = vcvt.s32.f32 %v1075_v7 }
0x1100   : > { %v1060_v0 = vsel %vm1056_vm11, %v1741_v19, 128  ;;  %v1091_v29 = vcvt.s32.f32 %v1089_v11 }
0x1101   : > { %1079 = vmin.xlane.f32.xlu1 %v1078_v61  ;;  %1093 = vmin.xlane.f32.xlu0 %v1092_v62  ;;  %v1104_v1 = vshra.s32 %v1060_v0, 16  ;;  %v1103_v33 = vand.u32 65535, %v1060_v0 }
0x1103   : > { %v1106_v3 = vcvt.s32.f32 %v1104_v1  ;;  %v1105_v36 = vcvt.s32.f32 %v1103_v33 }
0x1105   : > { %1107 = vmin.xlane.f32.xlu1 %v1106_v3 }
0x118a   : > { %v1066_v18 = vpop.xlane.xlu0 %1065 }
0x118b   : > { %vm1067_vm12 = vcmp.eq.f32.partialorder %v1064_v57, %v1066_v18  ;;  %v1072_v38 = vcvt.f32.s32 %v1066_v18 }
0x118c   : > { %v1068_v23 = vsel %vm1067_vm12, %v1063_v5, inf }
0x118d   : > { %1069 = vmin.xlane.f32.xlu0 %v1068_v23  ;;  %v1073_v34 = vshll.u32 %v1072_v38, 16 }
0x118e   : > { %v1080_v30 = vpop.xlane.xlu1 %1079  ;;  %v1094_v32 = vpop.xlane.xlu0 %1093 }
0x118f   : > { %vm1081_vm13 = vcmp.eq.f32.partialorder %v1078_v61, %v1080_v30  ;;  %vm1095_vm14 = vcmp.eq.f32.partialorder %v1092_v62, %v1094_v32  ;;  %v1086_v39 = vcvt.f32.s32 %v1080_v30  ;;  %v1100_v40 = vcvt.f32.s32 %v1094_v32 }
0x1190   : > { %v1082_v12 = vsel %vm1081_vm13, %v1077_v28, inf  ;;  %v1096_v35 = vsel %vm1095_vm14, %v1091_v29, inf }
0x1191   : > { %1083 = vmin.xlane.f32.xlu1 %v1082_v12  ;;  %1097 = vmin.xlane.f32.xlu0 %v1096_v35  ;;  %v1087_v31 = vshll.u32 %v1086_v39, 16  ;;  %v1101_v8 = vshll.u32 %v1100_v40, 16 }
0x1192   : > { %v1108_v10 = vpop.xlane.xlu1 %1107 }
0x1193   : > { %vm1109_vm15 = vcmp.eq.f32.partialorder %v1106_v3, %v1108_v10  ;;  %v1114_v52 = vcvt.f32.s32 %v1108_v10 }
0x1194   : > { %v1110_v2 = vsel %vm1109_vm15, %v1105_v36, inf }
0x1195   : > { %1111 = vmin.xlane.f32.xlu1 %v1110_v2  ;;  %v1115_v22 = vshll.u32 %v1114_v52, 16 }
0x121a   : > { %v1070_v6 = vpop.xlane.xlu0 %1069 }
0x121b   : > { %v1071_v42 = vcvt.f32.s32 %v1070_v6 }
0x121d   : > { %v1074_v43 = vadd.s32 %v1073_v34, %v1071_v42 }
0x121e   : > { %v1084_v45 = vpop.xlane.xlu1 %1083  ;;  %v1098_v48 = vpop.xlane.xlu0 %1097 }
0x121f   : > { %v1085_v49 = vcvt.f32.s32 %v1084_v45  ;;  %v1099_v51 = vcvt.f32.s32 %v1098_v48  ;;  %vm1117_vm1 = vcmp.eq.s32.totalorder %v1741_v19, %v1074_v43 }
0x1220   : > { %v2017_v46 = vsel %vm1117_vm1, 1e+30, %v1989_v24 }
0x1221   : > { %v1088_v44 = vadd.s32 %v1087_v31, %v1085_v49  ;;  %v1102_v37 = vadd.s32 %v1101_v8, %v1099_v51  ;;  %1125 = vmin.xlane.f32.xlu0 %v2017_v46 }
0x1222   : > { %v1112_v55 = vpop.xlane.xlu1 %1111 }
0x1223   : > { %vm1118_vm2 = vcmp.eq.s32.totalorder %v1741_v19, %v1088_v44  ;;  %vm1119_vm3 = vcmp.eq.s32.totalorder %v1741_v19, %v1102_v37  ;;  %v1113_v27 = vcvt.f32.s32 %v1112_v55 }
0x1224   : > { %v2023_v50 = vsel %vm1118_vm2, 1e+30, %v1995_v47  ;;  %v2026_v56 = vsel %vm1119_vm3, 1e+30, %v1998_v53 }
0x1225   : > { %1127 = vmin.xlane.f32.xlu1 %v2023_v50  ;;  %1129 = vmin.xlane.f32.xlu0 %v2026_v56  ;;  %v1116_v24 = vadd.s32 %v1115_v22, %v1113_v27 }
0x1227   : > { %vm1120_vm4 = vcmp.eq.s32.totalorder %v1741_v19, %v1116_v24 }
0x1228   : > { %v2032_v57 = vsel %vm1120_vm4, 1e+30, %v2004_v54 }
0x1229   : > { %1131 = vmin.xlane.f32.xlu1 %v2032_v57 }
0x12ae   : > { %v1126_v58 = vpop.xlane.xlu0 %1125 }
0x12af   : > { %vm1133_vm5 = vcmp.eq.f32.partialorder %v2017_v46, %v1126_v58 }
0x12b0   : > { %v1137_v47 = vsel %vm1133_vm5, %v1741_v19, 128 }
0x12b1   : > { %v1142_v41 = vshra.s32 %v1137_v47, 16  ;;  %v1141_v11 = vand.u32 65535, %v1137_v47 }
0x12b2   : > { %v1128_v53 = vpop.xlane.xlu1 %1127  ;;  %v1130_v59 = vpop.xlane.xlu0 %1129 }
0x12b3   : > { %v1144_v60 = vcvt.s32.f32 %v1142_v41  ;;  %vm1134_vm6 = vcmp.eq.f32.partialorder %v2023_v50, %v1128_v53  ;;  %vm1135_vm7 = vcmp.eq.f32.partialorder %v2026_v56, %v1130_v59  ;;  %v1143_v18 = vcvt.s32.f32 %v1141_v11 }
0x12b4   : > { %v1138_v61 = vsel %vm1134_vm6, %v1741_v19, 128  ;;  %v1139_v54 = vsel %vm1135_vm7, %v1741_v19, 128 }
0x12b5   : > { %v1156_v62 = vshra.s32 %v1138_v61, 16  ;;  %v1170_v63 = vshra.s32 %v1139_v54, 16  ;;  %1145 = vmin.xlane.f32.xlu0 %v1144_v60  ;;  %v1155_v23 = vand.u32 65535, %v1138_v61  ;;  %v1169_v28 = vand.u32 65535, %v1139_v54 }
0x12b6   : > { %v1132_v3 = vpop.xlane.xlu1 %1131 }
0x12b7   : > { %v1158_v0 = vcvt.s32.f32 %v1156_v62  ;;  %v1172_v1 = vcvt.s32.f32 %v1170_v63  ;;  %vm1136_vm8 = vcmp.eq.f32.partialorder %v2032_v57, %v1132_v3  ;;  %v1157_v32 = vcvt.s32.f32 %v1155_v23 }
0x12b8   : > { %v1140_v4 = vsel %vm1136_vm8, %v1741_v19, 128  ;;  %v1171_v33 = vcvt.s32.f32 %v1169_v28 }
0x12b9   : > { %1159 = vmin.xlane.f32.xlu1 %v1158_v0  ;;  %1173 = vmin.xlane.f32.xlu0 %v1172_v1  ;;  %v1184_v5 = vshra.s32 %v1140_v4, 16  ;;  %v1183_v36 = vand.u32 65535, %v1140_v4 }
0x12bb   : > { %v1186_v7 = vcvt.s32.f32 %v1184_v5  ;;  %v1185_v38 = vcvt.s32.f32 %v1183_v36 }
0x12bd   : > { %1187 = vmin.xlane.f32.xlu1 %v1186_v7 }
0x1342   : > { %v1146_v29 = vpop.xlane.xlu0 %1145 }
0x1343   : > { %vm1147_vm9 = vcmp.eq.f32.partialorder %v1144_v60, %v1146_v29  ;;  %v1152_v34 = vcvt.f32.s32 %v1146_v29 }
0x1344   : > { %v1148_v30 = vsel %vm1147_vm9, %v1143_v18, inf }
0x1345   : > { %1149 = vmin.xlane.f32.xlu0 %v1148_v30  ;;  %v1153_v43 = vshll.u32 %v1152_v34, 16 }
0x1346   : > { %v1160_v12 = vpop.xlane.xlu1 %1159  ;;  %v1174_v35 = vpop.xlane.xlu0 %1173 }
0x1347   : > { %vm1161_vm10 = vcmp.eq.f32.partialorder %v1158_v0, %v1160_v12  ;;  %vm1175_vm11 = vcmp.eq.f32.partialorder %v1172_v1, %v1174_v35  ;;  %v1166_v40 = vcvt.f32.s32 %v1160_v12  ;;  %v1180_v31 = vcvt.f32.s32 %v1174_v35 }
0x1348   : > { %v1162_v10 = vsel %vm1161_vm10, %v1157_v32, inf  ;;  %v1176_v2 = vsel %vm1175_vm11, %v1171_v33, inf }
0x1349   : > { %1163 = vmin.xlane.f32.xlu1 %v1162_v10  ;;  %1177 = vmin.xlane.f32.xlu0 %v1176_v2  ;;  %v1167_v8 = vshll.u32 %v1166_v40, 16  ;;  %v1181_v52 = vshll.u32 %v1180_v31, 16  ;;  %v309_v31 = vsub.f32 %v1735_v17, %v1743_v20 }
0x134a   : > { %v1188_v39 = vpop.xlane.xlu1 %1187 }
0x134b   : > { %vm1189_vm12 = vcmp.eq.f32.partialorder %v1186_v7, %v1188_v39  ;;  %v1194_v55 = vcvt.f32.s32 %v1188_v39 }
0x134c   : > { %v1190_v6 = vsel %vm1189_vm12, %v1185_v38, inf }
0x134d   : > { %1191 = vmin.xlane.f32.xlu1 %v1190_v6  ;;  %v1195_v47 = vshll.u32 %v1194_v55, 16 }
0x13d2   : > { %v1150_v42 = vpop.xlane.xlu0 %1149 }
0x13d3   : > { %v1151_v45 = vcvt.f32.s32 %v1150_v42 }
0x13d5   : > { %v1154_v48 = vadd.s32 %v1153_v43, %v1151_v45  ;;  %v307_v43 = vsub.f32 %v1733_v16, %v1745_v21 }
0x13d6   : > { %v1164_v49 = vpop.xlane.xlu1 %1163  ;;  %v1178_v51 = vpop.xlane.xlu0 %1177 }
0x13d7   : > { %v1165_v44 = vcvt.f32.s32 %v1164_v49  ;;  %v1179_v37 = vcvt.f32.s32 %v1178_v51  ;;  %vm1197_vm13 = vcmp.eq.s32.totalorder %v1741_v19, %v1154_v48  ;;  %v311_v45 = vmul.f32 2.0, %v307_v43 }
0x13d8   : > { %v2045_v22 = vsel %vm1197_vm13, 1e+30, %v2017_v46  ;;  %v308_v48 = vsub.f32 %v1729_v14, %v1755_v26 }
0x13d9   : > { %v1168_v27 = vadd.s32 %v1167_v8, %v1165_v44  ;;  %v1182_v24 = vadd.s32 %v1181_v52, %v1179_v37  ;;  %1205 = vmin.xlane.f32.xlu0 %v2045_v22  ;;  %v313_v8 = vmul.f32 2.0, %v309_v31  ;;  %v315_v49 = vmul.f32 1.442695, %v311_v45 }
0x13da   : > { %v1192_v58 = vpop.xlane.xlu1 %1191  ;;  %v312_v51 = vmul.f32 2.0, %v308_v48  ;;  %v310_v52 = vsub.f32 %v1731_v15, %v1753_v25 }
0x13db   : > { %vm1198_vm14 = vcmp.eq.s32.totalorder %v1741_v19, %v1168_v27  ;;  %vm1199_vm15 = vcmp.eq.s32.totalorder %v1741_v19, %v1182_v24  ;;  %v1193_v41 = vcvt.f32.s32 %v1192_v58  ;;  %v319_v44 = vmul.f32 1.442695, %v313_v8 }
0x13dc   : > { %v2051_v53 = vsel %vm1198_vm14, 1e+30, %v2023_v50  ;;  %v2054_v59 = vsel %vm1199_vm15, 1e+30, %v2026_v56  ;;  %1541 = vpow2.f32 %v315_v49  ;;  %v317_v37 = vmul.f32 1.442695, %v312_v51 }
0x13dd   : > { %1207 = vmin.xlane.f32.xlu1 %v2051_v53  ;;  %1209 = vmin.xlane.f32.xlu0 %v2054_v59  ;;  %v1196_v46 = vadd.s32 %v1195_v47, %v1193_v41  ;;  %v314_v27 = vmul.f32 2.0, %v310_v52  ;;  %1543 = vpow2.f32 %v319_v44 }
0x13de   : > { %1545 = vpow2.f32 %v317_v37 }
0x13df   : > { %vm1200_vm1 = vcmp.eq.s32.totalorder %v1741_v19, %v1196_v46  ;;  %v321_v41 = vmul.f32 1.442695, %v314_v27 }
0x13e0   : > { %v2060_v60 = vsel %vm1200_vm1, 1e+30, %v2032_v57 }
0x13e1   : > { %1211 = vmin.xlane.f32.xlu1 %v2060_v60  ;;  %1547 = vpow2.f32 %v321_v41 }
0x1466   : > { %v1206_v61 = vpop.xlane.xlu0 %1205 }
0x1467   : > { %vm1213_vm2 = vcmp.eq.f32.partialorder %v2045_v22, %v1206_v61 }
0x1468   : > { %v1217_v50 = vsel %vm1213_vm2, %v1741_v19, 128 }
0x1469   : > { %v1222_v54 = vshra.s32 %v1217_v50, 16  ;;  %v1221_v28 = vand.u32 65535, %v1217_v50 }
0x146a   : > { %v1208_v56 = vpop.xlane.xlu1 %1207  ;;  %v1210_v62 = vpop.xlane.xlu0 %1209 }
0x146b   : > { %v1224_v63 = vcvt.s32.f32 %v1222_v54  ;;  %vm1214_vm3 = vcmp.eq.f32.partialorder %v2051_v53, %v1208_v56  ;;  %vm1215_vm4 = vcmp.eq.f32.partialorder %v2054_v59, %v1210_v62  ;;  %v1223_v29 = vcvt.s32.f32 %v1221_v28 }
0x146c   : > { %v1218_v0 = vsel %vm1214_vm3, %v1741_v19, 128  ;;  %v1219_v57 = vsel %vm1215_vm4, %v1741_v19, 128 }
0x146d   : > { %v1236_v1 = vshra.s32 %v1218_v0, 16  ;;  %v1250_v3 = vshra.s32 %v1219_v57, 16  ;;  %1225 = vmin.xlane.f32.xlu0 %v1224_v63  ;;  %v1235_v30 = vand.u32 65535, %v1218_v0  ;;  %v1249_v32 = vand.u32 65535, %v1219_v57  ;;  %v1542_v0 = vpop.eup %1541 }
0x146e   : > { %v1212_v7 = vpop.xlane.xlu1 %1211 }
0x146f   : > { %v1238_v4 = vcvt.s32.f32 %v1236_v1  ;;  %v1252_v5 = vcvt.s32.f32 %v1250_v3  ;;  %vm1216_vm5 = vcmp.eq.f32.partialorder %v2060_v60, %v1212_v7  ;;  %v1237_v35 = vcvt.s32.f32 %v1235_v30 }
0x1470   : > { %v1220_v11 = vsel %vm1216_vm5, %v1741_v19, 128  ;;  %v1251_v36 = vcvt.s32.f32 %v1249_v32  ;;  %v1302_v32 = vld [vmem:[%s1713_s17 + $0x8] sm:$0xff] }
0x1471   : > { %1239 = vmin.xlane.f32.xlu1 %v1238_v4  ;;  %1253 = vmin.xlane.f32.xlu0 %v1252_v5  ;;  %v1264_v18 = vshra.s32 %v1220_v11, 16  ;;  %v1263_v38 = vand.u32 65535, %v1220_v11 }
0x1473   : > { %v1266_v23 = vcvt.s32.f32 %v1264_v18  ;;  %v1265_v34 = vcvt.s32.f32 %v1263_v38 }
0x1475   : > { %1267 = vmin.xlane.f32.xlu1 %v1266_v23 }
0x14fa   : > { %v1226_v33 = vpop.xlane.xlu0 %1225 }
0x14fb   : > { %vm1227_vm6 = vcmp.eq.f32.partialorder %v1224_v63, %v1226_v33  ;;  %v1232_v55 = vcvt.f32.s32 %v1226_v33  ;;  %v1309_v33 = vsel %vm201_vm0, %v1718_v9, 0.0 }
0x14fc   : > { %v1228_v12 = vsel %vm1227_vm6, %v1223_v29, inf }
0x14fd   : > { %1229 = vmin.xlane.f32.xlu0 %v1228_v12  ;;  %v1233_v17 = vshll.u32 %v1232_v55, 16  ;;  %v1557_v12 = vld [vmem:[%s1708_s9 + $0x8] sm:$0xff] }
0x14fe   : > { %v1240_v10 = vpop.xlane.xlu1 %1239  ;;  %v1254_v2 = vpop.xlane.xlu0 %1253 }
0x14ff   : > { %vm1241_vm7 = vcmp.eq.f32.partialorder %v1238_v4, %v1240_v10  ;;  %vm1255_vm8 = vcmp.eq.f32.partialorder %v1252_v5, %v1254_v2  ;;  %v1246_v16 = vcvt.f32.s32 %v1240_v10  ;;  %v1260_v58 = vcvt.f32.s32 %v1254_v2  ;;  %v1544_v5 = vpop.eup %1543 }
0x1500   : > { %v1242_v39 = vsel %vm1241_vm7, %v1237_v35, inf  ;;  %v1256_v6 = vsel %vm1255_vm8, %v1251_v36, inf  ;;  %v1304_v36 = vld [vmem:[%s1713_s17 + $0x18] sm:$0xff]  ;;  %v1315_v2 = vsel %vm201_vm0, %v1725_v13, 0.0 }
0x1501   : > { %1243 = vmin.xlane.f32.xlu1 %v1242_v39  ;;  %1257 = vmin.xlane.f32.xlu0 %v1256_v6  ;;  %v1247_v46 = vshll.u32 %v1246_v16, 16  ;;  %v1261_v54 = vshll.u32 %v1260_v58, 16  ;;  %v1558_v39 = vld [vmem:[%s1708_s9 + $0x18] sm:$0xff] }
0x1502   : > { %v1268_v40 = vpop.xlane.xlu1 %1267 }
0x1503   : > { %vm1269_vm9 = vcmp.eq.f32.partialorder %v1266_v23, %v1268_v40  ;;  %v1274_v62 = vcvt.f32.s32 %v1268_v40  ;;  %v1546_v23 = vpop.eup %1545 }
0x1504   : > { %v1270_v42 = vsel %vm1269_vm9, %v1265_v34, inf  ;;  %v1548_v35 = vpop.eup %1547 }
0x1505   : > { %1271 = vmin.xlane.f32.xlu1 %v1270_v42  ;;  %v1275_v7 = vshll.u32 %v1274_v62, 16 }
0x158a   : > { %v1230_v24 = vpop.xlane.xlu0 %1229 }
0x158b   : > { %v1231_v47 = vcvt.f32.s32 %v1230_v24 }
0x158d   : > { %v1234_v14 = vadd.s32 %v1233_v17, %v1231_v47 }
0x158e   : > { %v1244_v61 = vpop.xlane.xlu1 %1243  ;;  %v1258_v50 = vpop.xlane.xlu0 %1257 }
0x158f   : > { %v1245_v56 = vcvt.f32.s32 %v1244_v61  ;;  %v1259_v15 = vcvt.f32.s32 %v1258_v50  ;;  %vm1277_vm10 = vcmp.eq.s32.totalorder %v1741_v19, %v1234_v14 }
0x1590   : > { %v1281_v63 = vsel %vm1277_vm10, 1e+30, %v2045_v22 }
0x1591   : > { %v1248_v57 = vadd.s32 %v1247_v46, %v1245_v56  ;;  %v1262_v1 = vadd.s32 %v1261_v54, %v1259_v15  ;;  %vm1285_vm11 = vcmp.lt.f32.partialorder %v1281_v63, 5e+29 }
0x1592   : > { %v1289_v3 = vsel %vm1285_vm11, %v1542_v0, 0.0  ;;  %v1272_v4 = vpop.xlane.xlu1 %1271 }
0x1593   : > { %1293 = vadd.xlane.f32.xlu0 %v1289_v3  ;;  %vm1278_vm12 = vcmp.eq.s32.totalorder %v1741_v19, %v1248_v57  ;;  %vm1279_vm13 = vcmp.eq.s32.totalorder %v1741_v19, %v1262_v1  ;;  %v1273_v11 = vcvt.f32.s32 %v1272_v4 }
0x1594   : > { %v1282_v18 = vsel %vm1278_vm12, 1e+30, %v2051_v53  ;;  %v1283_v22 = vsel %vm1279_vm13, 1e+30, %v2054_v59  ;;  %v1306_v59 = vmul.f32 %v1557_v12, %v1302_v32 }
0x1595   : > { %vm1286_vm14 = vcmp.lt.f32.partialorder %v1282_v18, 5e+29  ;;  %vm1287_vm15 = vcmp.lt.f32.partialorder %v1283_v22, 5e+29  ;;  %v1276_v28 = vadd.s32 %v1275_v7, %v1273_v11 }
0x1596   : > { %v1290_v29 = vsel %vm1286_vm14, %v1546_v23, 0.0  ;;  %v1291_v30 = vsel %vm1287_vm15, %v1544_v5, 0.0  ;;  %v1312_v38 = vsel %vm201_vm0, %v1306_v59, 0.0 }
0x1597   : > { %1295 = vadd.xlane.f32.xlu1 %v1290_v29  ;;  %1297 = vadd.xlane.f32.xlu0 %v1291_v30  ;;  %vm1280_vm1 = vcmp.eq.s32.totalorder %v1741_v19, %v1276_v28  ;;  %v1308_v19 = vmul.f32 %v1558_v39, %v1304_v36 }
0x1598   : > { %v1284_v53 = vsel %vm1280_vm1, 1e+30, %v2060_v60 }
0x1599   : > { %vm1288_vm2 = vcmp.lt.f32.partialorder %v1284_v53, 5e+29  ;;  %v1318_v9 = vsel %vm201_vm0, %v1308_v19, 0.0  ;;  %vm1345_vm0 = vcmask 7168  }
0x159a   : > { %v1292_v10 = vsel %vm1288_vm2, %v1548_v35, 0.0 }
0x159b   : > { %1310 = vadd.xlane.f32.xlu0 %v1309_v33  ;;  %1299 = vadd.xlane.f32.xlu1 %v1292_v10 }
0x159f   : > { %1316 = vadd.xlane.f32.xlu0 %v1315_v2  ;;  %1313 = vadd.xlane.f32.xlu1 %v1312_v38 }
0x15a3   : > { %1319 = vadd.xlane.f32.xlu1 %v1318_v9 }
0x1620   : > { %v1294_v60 = vpop.xlane.xlu0 %1293 }
0x1621   : > { %1549 = vlog2.f32 %v1294_v60 }
0x1624   : > { %v1296_v6 = vpop.xlane.xlu1 %1295  ;;  %v1298_v34 = vpop.xlane.xlu0 %1297 }
0x1625   : > { %1551 = vlog2.f32 %v1296_v6 }
0x1626   : > { %1553 = vlog2.f32 %v1298_v34 }
0x1628   : > { %v1311_v40 = vpop.xlane.xlu0 %1310  ;;  %v1300_v42 = vpop.xlane.xlu1 %1299 }
0x1629   : > { %v1329_v43 = vsub.f32 %v1745_v21, %v1311_v40  ;;  %1555 = vlog2.f32 %v1300_v42 }
0x162b   : > { %v1550_v13 = vpop.eup %1549  ;;  %v1333_v31 = vmul.f32 2.0, %v1329_v43 }
0x162c   : > { %v1322_v45 = vmul.f32 0.6931472, %v1550_v13  ;;  %v1317_v48 = vpop.xlane.xlu0 %1316  ;;  %v1314_v8 = vpop.xlane.xlu1 %1313 }
0x162d   : > { %v1331_v49 = vsub.f32 %v1743_v20, %v1317_v48  ;;  %v1330_v52 = vsub.f32 %v1755_v26, %v1314_v8 }
0x162e   : > { %v1337_v51 = vadd.f32 %v1333_v31, %v1322_v45 }
0x162f   : > { %v1552_v44 = vpop.eup %1551  ;;  %v1335_v37 = vmul.f32 2.0, %v1331_v49  ;;  %v1334_v16 = vmul.f32 2.0, %v1330_v52 }
0x1630   : > { %v1554_v55 = vpop.eup %1553  ;;  %v1324_v27 = vmul.f32 0.6931472, %v1552_v44  ;;  %v1320_v17 = vpop.xlane.xlu1 %1319  ;;  %v1341_v58 = vmul.f32 0.5, %v1337_v51 }
0x1631   : > { %v1326_v24 = vmul.f32 0.6931472, %v1554_v55  ;;  %v1332_v47 = vsub.f32 %v1753_v25, %v1320_v17 }
0x1632   : > { %v1338_v21 = vadd.f32 %v1334_v16, %v1324_v27  ;;  %v1346_v54 = vsel %vm1345_vm0, %v1341_v58, 0.0 }
0x1633   : > { %v1339_v41 = vadd.f32 %v1335_v37, %v1326_v24  ;;  %v1556_v14 = vpop.eup %1555  ;;  %v1336_v61 = vmul.f32 2.0, %v1332_v47 }
0x1634   : > { %v1342_v46 = vmul.f32 0.5, %v1338_v21  ;;  %v1328_v20 = vmul.f32 0.6931472, %v1556_v14 }
0x1635   : > { %v1343_v50 = vmul.f32 0.5, %v1339_v41 }
0x1636   : > { %v1347_v26 = vsel %vm1345_vm0, %v1342_v46, 0.0  ;;  %v1340_v15 = vadd.f32 %v1336_v61, %v1328_v20 }
0x1637   : > { %v1348_v56 = vadd.f32 %v1347_v26, %v1346_v54  ;;  %v1349_v62 = vsel %vm1345_vm0, %v1343_v50, 0.0 }
0x1638   : > { %v1344_v63 = vmul.f32 0.5, %v1340_v15 }
0x1639   : > { %v1350_v0 = vadd.f32 %v1349_v62, %v1348_v56 }
0x163a   : > { %v1351_v57 = vsel %vm1345_vm0, %v1344_v63, 0.0 }
0x163b   : > { %v1352_v1 = vadd.f32 %v1351_v57, %v1350_v0 }
0x163d   : > { %1353 = vadd.xlane.f32.xlu0 %v1352_v1 }
0x16ca   : > { %v1354_v25 = vpop.xlane.xlu0 %1353 }
0x16cb   : > { %v1355_v3 = vrot.slane %v1354_v25, 4 }
0x16cd   : > { %v1356_v4 = vadd.f32 %v1355_v3, %v1354_v25 }
0x16cf   : > { %v1357_v5 = vrot.slane %v1356_v4, 2 }
0x16d1   : > { %v1358_v7 = vadd.f32 %v1357_v5, %v1356_v4 }
0x16d3   : > { %v1359_v11 = vrot.slane %v1358_v7, 1 }
0x16d5   : > { %v1360_v18 = vadd.f32 %v1359_v11, %v1358_v7 }
0x16d7   : > { %1500 = vpush %v1360_v18 }
0x1708   : > { %s1501_s27 = spop %1500 }
0x1709   : > { %v1362_v22 = vstv %s1501_s27 }
0x170a   : > { %1363 = vst [vmem:[%s180_s24] sm:$0xff] %v1362_v22 }
0x170b   : > { %1572 = shalt.err (!%p1569_p3)
}
0x170c   : > { %s1573_s8 = scalar_lea.hbm %s2108_s30, 128  ;;  %s1577_s11 = scalar_lea.hbm %s2151_s3, 512 }
0x170d   : > { %p1574_p4 = scmp.ne.s32.totalorder %s2108_s30, %s1573_s8  ;;  %p1578_p9 = scmp.lt.u32.totalorder %s2108_s30, %s2151_s3 }
0x170e   : > { %p1579_p10 = scmp.lt.u32.totalorder %s1577_s11, %s1573_s8  ;;  %p1581_p12 = scmp.lt.u32.totalorder %s1573_s8, %s2108_s30 }
0x170f   : > { %p1575_p7 = pnand %p1574_p4, %p1682_p5 }
0x1710   : > { %p1580_p11 = por %p1579_p10, %p1578_p9 }
0x1711   : > { %p1576_p8 = pneg %p1575_p7 }
0x1712   : > { %p1582_p13 = por %p1581_p12, %p1580_p11 }
0x1714   : > { %p1583_p0 = pnand %p1582_p13, %p1576_p8 }
0x1716   : > { %1586 = shalt.err (!%p1583_p0)
}
0x1717   : > { %1502 = dma.vmem_to_hbm [thread:$0]  (%p1682_p5), %s2103_s25, 128, %s2108_s30, %s1365_s4  }
0x1718 PF: > { %p1508_p1 = scmp.ge.s32.totalorder %s1621_s15, 2  ;;  %s1390_s20 = sand.u32 1, %s1609_s12  }
0x1719   : > { %s1391_s24 = scalar_lea.sflag [#allocation3], %s1390_s20 }
0x171a   : > { %p1505_p2 = pnand %p1508_p1, %p1686_p6 }
0x171c   : > { %1604 = dma.done.wait (!%p1505_p2), %s1391_s24, 128  }
0x171d   : > { %1606 = vsyncadd (!%p1505_p2), %s1391_s24, 4294967168  ;;  %p13_p3 = scmp.ge.s32.totalorder %s1669_s18, 6   ;;  %s2154_s12 = smov %s1613_s13 }
0x171e   : > { %s2155_s13 = smov %s1617_s14  ;;  %s2156_s14 = smov %s1680_s21 }
0x171f   : > { %s2157_s15 = smov %s1669_s18  ;;  %15 = sbr.rel (!%p13_p3) target bundleno = 3 (0x3), region = 70 }
0x1726   :  { %1396 = vsyncpa [#allocation3], 1 }
0x1727   :  { %1398 = vsyncpa [#allocation3 + $0x1], 1 }

</bundles_post_ra>
